<compile_context>
chip_gen: v7x
topology: tpu7x:2x2x1
jax: 0.10.0
libtpu: 0.0.40
codegen_flags: <defaults>
</compile_context>

<pallas_src>
import math
from functools import partial

import jax
import jax.numpy as jnp
from jax.experimental import pallas as pl
from jax.experimental.pallas import tpu as pltpu


# ------------------------- per-generation budgets -------------------------- #
def _device_budget():
    vmem_cap = 64 << 20
    try:
        info = pltpu.get_tpu_info()
        cap = getattr(info, "vmem_capacity_bytes", None)
        if cap:
            vmem_cap = int(cap)
    except Exception:
        pass
    if vmem_cap >= (100 << 20):        # v5e / v6e: 128 MiB physical VMEM
        return {"vmem_limit": 96 << 20, "tm": 512, "tj": 1024, "tn": 1024}
    # v7x (64 MiB per TC) or unknown: conservative budget.
    return {"vmem_limit": 32 << 20, "tm": 256, "tj": 512, "tn": 512}


_BUDGET = _device_budget()


def _pick_tile(dim, pref, quantum):
    """Largest tile <= pref that divides dim and is a multiple of `quantum`.
    Falls back to the full dim (block == full array extent is always legal)."""
    if dim <= pref:
        return dim
    t = (pref // quantum) * quantum
    while t >= quantum:
        if dim % t == 0:
            return t
        t -= quantum
    return dim   # non-factorable dim: single full-extent block (legal, noted)


# --------------------------------------------------------------------------- #
# Kernel 1: fused attention block.
#   out = x + proj(concat_h(softmax(mask(q_h k_h^T / sqrt(K))) v_h)) + b_proj
#   q/k from fused full-width projections of LN1(x), RoPE folded into weights.
# Grid (B,): one step per batch element; heads are a static in-kernel loop so
# LN1, the Q/K projections and the mask are computed/loaded once per element.
# --------------------------------------------------------------------------- #
def _attn_block_kernel(x_ref, g_ref, b_ref, wqc_ref, wqs_ref, wkc_ref, wks_ref,
                       wv_ref, pw_ref, pb_ref, cos_ref, sin_ref, mask_ref,
                       o_ref, *, num_heads, head_size):
    x = x_ref[0]                                            # (T, D) f32 residual
    # LayerNorm1 (f32 statistics, PyTorch eps=1e-5) — once per batch element.
    mean = jnp.mean(x, axis=-1, keepdims=True)
    var = jnp.mean((x - mean) ** 2, axis=-1, keepdims=True)
    ln = (x - mean) * jax.lax.rsqrt(var + 1e-5) * g_ref[...] + b_ref[...]
    ln_bf = ln.astype(jnp.bfloat16)                         # bf16 MXU operand

    cos = cos_ref[...]                                      # (T, H*K) f32
    sin = sin_ref[...]
    inv_scale = 1.0 / math.sqrt(head_size)

    # Fused full-width Q/K projections with RoPE folded into the weights:
    #   rope(ln @ Wq) = (ln @ Wq) * cos + (ln @ (Wq R)) * sin   (exact).
    q = (jnp.dot(ln_bf, wqc_ref[...], preferred_element_type=jnp.float32) * cos
         + jnp.dot(ln_bf, wqs_ref[...], preferred_element_type=jnp.float32) * sin)
    q = (q * inv_scale).astype(jnp.bfloat16)                # scale folded into q
    k = (jnp.dot(ln_bf, wkc_ref[...], preferred_element_type=jnp.float32) * cos
         + jnp.dot(ln_bf, wks_ref[...], preferred_element_type=jnp.float32) * sin)
    k = k.astype(jnp.bfloat16)

    add_mask = mask_ref[...]                                # additive causal mask

    acc = x + pb_ref[...]                                   # residual + proj bias
    for h in range(num_heads):                              # static unroll (H small)
        sl = slice(h * head_size, (h + 1) * head_size)
        # scores = q_h k_h^T  (already scaled), contracted on the head dim.
        s = jax.lax.dot_general(q[:, sl], k[:, sl], (((1,), (1,)), ((), ())),
                                preferred_element_type=jnp.float32) + add_mask
        m = jnp.max(s, axis=-1, keepdims=True)
        e = jnp.exp(s - m)
        w = (e * pl.reciprocal(jnp.sum(e, axis=-1, keepdims=True),
                               approx=True)).astype(jnp.bfloat16)
        v = jnp.dot(ln_bf, wv_ref[h], preferred_element_type=jnp.float32)  # (T, D)
        ho = jnp.dot(w, v.astype(jnp.bfloat16),
                     preferred_element_type=jnp.float32)                   # (T, D)
        # concat over heads == sum_h head_h @ W_proj[h-block]  (dropout == id).
        acc = acc + jnp.dot(ho.astype(jnp.bfloat16), pw_ref[h],
                            preferred_element_type=jnp.float32)
    o_ref[0] = acc.astype(o_ref.dtype)


def attention_block(x, ln_g, ln_b, wqc, wqs, wkc, wks, wv, pw3, proj_b,
                    cos, sin, mask, num_heads, head_size,
                    *, vmem_limit=_BUDGET["vmem_limit"]):
    """x: (B,T,D) f32; wqc/wqs/wkc/wks: (D,H*K) bf16; wv/pw3: (H,D,D) bf16."""
    B, T, D = x.shape
    HK = wqc.shape[1]
    H = num_heads
    return pl.pallas_call(
        partial(_attn_block_kernel, num_heads=H, head_size=head_size),
        out_shape=jax.ShapeDtypeStruct((B, T, D), x.dtype),
        grid=(B,),
        in_specs=[
            pl.BlockSpec((1, T, D), lambda b: (b, 0, 0)),    # x (per batch elt)
            pl.BlockSpec((1, D), lambda b: (0, 0)),          # ln1 gamma  (resident)
            pl.BlockSpec((1, D), lambda b: (0, 0)),          # ln1 beta
            pl.BlockSpec((D, HK), lambda b: (0, 0)),         # Wq (fused heads)
            pl.BlockSpec((D, HK), lambda b: (0, 0)),         # Wq @ R (RoPE sin part)
            pl.BlockSpec((D, HK), lambda b: (0, 0)),         # Wk
            pl.BlockSpec((D, HK), lambda b: (0, 0)),         # Wk @ R
            pl.BlockSpec((H, D, D), lambda b: (0, 0, 0)),    # Wv (all heads)
            pl.BlockSpec((H, D, D), lambda b: (0, 0, 0)),    # proj weight per head
            pl.BlockSpec((1, D), lambda b: (0, 0)),          # proj bias
            pl.BlockSpec((T, HK), lambda b: (0, 0)),         # RoPE cos (tiled)
            pl.BlockSpec((T, HK), lambda b: (0, 0)),         # RoPE sin (tiled)
            pl.BlockSpec((T, T), lambda b: (0, 0)),          # additive causal mask
        ],
        out_specs=pl.BlockSpec((1, T, D), lambda b: (b, 0, 0)),
        compiler_params=pltpu.CompilerParams(
            dimension_semantics=("parallel",),
            vmem_limit_bytes=vmem_limit),
    )(x, ln_g.reshape(1, D), ln_b.reshape(1, D), wqc, wqs, wkc, wks,
      wv, pw3, proj_b.reshape(1, D), cos, sin, mask)


# --------------------------------------------------------------------------- #
# Kernel 2: fused feed-forward block.
#   out = x + (relu(LN2(x) @ W1 + b1) @ W2 + b2)
# Grid (token tiles, hidden tiles): the 4D hidden dim is the tiled reduction
# axis ("arbitrary", innermost) with an f32 accumulator; LN2(x) is computed
# once per token tile into a bf16 scratch.
# --------------------------------------------------------------------------- #
def _ffn_block_kernel(x_ref, g_ref, b_ref, w1_ref, b1_ref, w2_ref, b2_ref,
                      o_ref, acc_ref, ln_ref):
    j = pl.program_id(1)

    @pl.when(j == 0)
    def _():
        acc_ref[...] = jnp.zeros_like(acc_ref)
        x = x_ref[...]
        mean = jnp.mean(x, axis=-1, keepdims=True)
        var = jnp.mean((x - mean) ** 2, axis=-1, keepdims=True)
        ln = (x - mean) * jax.lax.rsqrt(var + 1e-5) * g_ref[...] + b_ref[...]
        ln_ref[...] = ln.astype(ln_ref.dtype)               # bf16 MXU operand

    hidden = jnp.dot(ln_ref[...], w1_ref[...],
                     preferred_element_type=jnp.float32) + b1_ref[...]
    hidden = jnp.maximum(hidden, 0.0).astype(jnp.bfloat16)  # ReLU, then bf16
    acc_ref[...] += jnp.dot(hidden, w2_ref[...],
                            preferred_element_type=jnp.float32)

    @pl.when(j == pl.num_programs(1) - 1)
    def _():
        # second bias + residual fused into the epilogue (dropout == identity).
        o_ref[...] = (acc_ref[...] + b2_ref[...] + x_ref[...]).astype(o_ref.dtype)


def ffn_block(x2d, ln_g, ln_b, w1, b1, w2, b2,
              *, tm=_BUDGET["tm"], tj=_BUDGET["tj"],
              vmem_limit=_BUDGET["vmem_limit"]):
    """x2d: (M, D) f32; w1: (D, 4D) bf16; w2: (4D, D) bf16."""
    M, D = x2d.shape
    Dh = w1.shape[1]
    tm = _pick_tile(M, tm, 8)
    tj = _pick_tile(Dh, tj, 128)
    return pl.pallas_call(
        _ffn_block_kernel,
        out_shape=jax.ShapeDtypeStruct((M, D), x2d.dtype),
        grid=(M // tm, Dh // tj),
        in_specs=[
            pl.BlockSpec((tm, D), lambda m, j: (m, 0)),      # x (resident over j)
            pl.BlockSpec((1, D), lambda m, j: (0, 0)),       # ln2 gamma
            pl.BlockSpec((1, D), lambda m, j: (0, 0)),       # ln2 beta
            pl.BlockSpec((D, tj), lambda m, j: (0, j)),      # W1 column block
            pl.BlockSpec((1, tj), lambda m, j: (0, j)),      # b1 block
            pl.BlockSpec((tj, D), lambda m, j: (j, 0)),      # W2 row block
            pl.BlockSpec((1, D), lambda m, j: (0, 0)),       # b2
        ],
        out_specs=pl.BlockSpec((tm, D), lambda m, j: (m, 0)),
        scratch_shapes=[pltpu.VMEM((tm, D), jnp.float32),    # accumulator
                        pltpu.VMEM((tm, D), jnp.bfloat16)],  # cached LN2(x)
        compiler_params=pltpu.CompilerParams(
            dimension_semantics=("parallel", "arbitrary"),
            vmem_limit_bytes=vmem_limit),
    )(x2d, ln_g.reshape(1, D), ln_b.reshape(1, D), w1, b1.reshape(1, Dh),
      w2, b2.reshape(1, D))


# --------------------------------------------------------------------------- #
# Final kernel: fused LN_f + LM head, tiled over (tokens, vocab).
# Vocab axis innermost/"arbitrary" so LN(x) is cached in scratch across it.
# --------------------------------------------------------------------------- #
def _ln_linear_kernel(x_ref, g_ref, b_ref, w_ref, bias_ref, o_ref, ln_ref):
    @pl.when(pl.program_id(1) == 0)
    def _():
        x = x_ref[...]
        mean = jnp.mean(x, axis=-1, keepdims=True)
        var = jnp.mean((x - mean) ** 2, axis=-1, keepdims=True)
        ln = (x - mean) * jax.lax.rsqrt(var + 1e-5) * g_ref[...] + b_ref[...]
        ln_ref[...] = ln.astype(ln_ref.dtype)

    o_ref[...] = (jnp.dot(ln_ref[...], w_ref[...],
                          preferred_element_type=jnp.float32)
                  + bias_ref[...]).astype(o_ref.dtype)


def ln_linear(x2d, ln_g, ln_b, w, bias,
              *, tm=_BUDGET["tm"], tn=_BUDGET["tn"],
              vmem_limit=_BUDGET["vmem_limit"]):
    """y = LN(x2d) @ w + bias. x2d: (M, D) f32, w: (D, N) bf16."""
    M, D = x2d.shape
    N = w.shape[1]
    tm = _pick_tile(M, tm, 8)
    tn = _pick_tile(N, tn, 128)
    return pl.pallas_call(
        _ln_linear_kernel,
        out_shape=jax.ShapeDtypeStruct((M, N), x2d.dtype),
        grid=(M // tm, N // tn),
        in_specs=[
            pl.BlockSpec((tm, D), lambda m, n: (m, 0)),
            pl.BlockSpec((1, D), lambda m, n: (0, 0)),
            pl.BlockSpec((1, D), lambda m, n: (0, 0)),
            pl.BlockSpec((D, tn), lambda m, n: (0, n)),
            pl.BlockSpec((1, tn), lambda m, n: (0, n)),
        ],
        out_specs=pl.BlockSpec((tm, tn), lambda m, n: (m, n)),
        scratch_shapes=[pltpu.VMEM((tm, D), jnp.bfloat16)],  # cached LN_f(x)
        compiler_params=pltpu.CompilerParams(
            dimension_semantics=("parallel", "arbitrary"),
            vmem_limit_bytes=vmem_limit),
    )(x2d, ln_g.reshape(1, D), ln_b.reshape(1, D), w, bias.reshape(1, N))


# ------------------------------- glue / setup ------------------------------ #

def rope_tables(T, K, H, base=10000.0):
    """Interleaved RoPE cos/sin tables tiled across heads: (T, H*K) f32."""
    half = K // 2
    inv_freq = base ** (-jnp.arange(half, dtype=jnp.float32) * 2.0 / K)
    ang = jnp.arange(T, dtype=jnp.float32)[:, None] * inv_freq[None, :]   # (T, K/2)
    cos = jnp.repeat(jnp.cos(ang), 2, axis=-1)                            # (T, K)
    sin = jnp.repeat(jnp.sin(ang), 2, axis=-1)
    return jnp.tile(cos, (1, H)), jnp.tile(sin, (1, H))                   # (T, H*K)


def causal_mask(T):
    """Additive causal mask: 0 on/below the diagonal, -inf above."""
    i = jnp.arange(T)
    return jnp.where(i[None, :] <= i[:, None], 0.0, -jnp.inf).astype(jnp.float32)


def init_params(key, vocab_size, embed_size, num_heads, n_layers):
    D, H = embed_size, num_heads
    K = D // H
    std = 0.02
    keys = iter(jax.random.split(key, 2 + n_layers * (3 * H + 3)))

    def nrm(shape, dtype=jnp.bfloat16):
        # Matmul weights stored in bf16 (MXU-native, halves HBM/VMEM traffic).
        w = std * jax.random.normal(next(keys), shape, dtype=jnp.float32)
        return w.astype(dtype)

    def rot_cols(w):
        # Interleaved rotate-half applied to output columns (exact +/-1 perm):
        #   out[..., 2i] = -w[..., 2i+1], out[..., 2i+1] = w[..., 2i].
        return jnp.stack([-w[..., 1::2], w[..., 0::2]], axis=-1).reshape(w.shape)

    def fuse(w):   # (H, D, K) -> (D, H*K), head h occupies columns [h*K,(h+1)*K)
        return jnp.transpose(w, (1, 0, 2)).reshape(D, H * K)

    layers = []
    for _ in range(n_layers):
        wq = jnp.stack([nrm((D, K)) for _ in range(H)])     # == torch (K,D).T per head
        wk = jnp.stack([nrm((D, K)) for _ in range(H)])
        wv = jnp.stack([nrm((D, D)) for _ in range(H)])
        proj_w = nrm((H * D, D))                            # == torch (D, H*D).T
        layers.append(dict(
            ln1_g=jnp.ones((D,), jnp.float32), ln1_b=jnp.zeros((D,), jnp.float32),
            ln2_g=jnp.ones((D,), jnp.float32), ln2_b=jnp.zeros((D,), jnp.float32),
            wqc=fuse(wq), wqs=fuse(rot_cols(wq)),           # RoPE folded into weights
            wkc=fuse(wk), wks=fuse(rot_cols(wk)),
            wv=wv,
            proj_w3=proj_w.reshape(H, D, D), proj_b=jnp.zeros((D,), jnp.float32),
            ff1_w=nrm((D, 4 * D)), ff1_b=jnp.zeros((4 * D,), jnp.float32),
            ff2_w=nrm((4 * D, D)), ff2_b=jnp.zeros((D,), jnp.float32),
        ))
    params = dict(
        layers=layers,
        embed=nrm((vocab_size, D), jnp.float32),
        lnf_g=jnp.ones((D,), jnp.float32), lnf_b=jnp.zeros((D,), jnp.float32),
        lm_w=nrm((D, vocab_size)), lm_b=jnp.zeros((vocab_size,), jnp.float32),
    )
    return params


def transformer_upgraded_forward(token_ids, params, num_heads):
    B, T = token_ids.shape
    emb = params["embed"]
    D = emb.shape[1]
    K = D // num_heads
    cos, sin = rope_tables(T, K, num_heads)
    mask = causal_mask(T)

    x = emb[token_ids]                    # (B,T,D) embedding gather (XLA glue)

    for lp in params["layers"]:
        # Fused: LN1 + fused-QK+RoPE + causal attention + proj + bias + residual.
        x = attention_block(x, lp["ln1_g"], lp["ln1_b"],
                            lp["wqc"], lp["wqs"], lp["wkc"], lp["wks"],
                            lp["wv"], lp["proj_w3"], lp["proj_b"],
                            cos, sin, mask, num_heads, K)
        # Fused: LN2 + ff1 + ReLU + ff2 + bias + residual (hidden dim tiled).
        x = ffn_block(x.reshape(B * T, D), lp["ln2_g"], lp["ln2_b"],
                      lp["ff1_w"], lp["ff1_b"], lp["ff2_w"], lp["ff2_b"]
                      ).reshape(B, T, D)

    # Fused: LN_f + LM head (tiled over tokens and vocab, LN cached).
    logits = ln_linear(x.reshape(B * T, D), params["lnf_g"], params["lnf_b"],
                       params["lm_w"], params["lm_b"]).reshape(B, T, -1)
    return logits, None


if __name__ == "__main__":
    vocab_size = 64
    context_window_size = 8
    embed_size = 32
    num_heads = 4
    n_layers = 2
    B, T = 2, context_window_size

    params = init_params(jax.random.PRNGKey(0), vocab_size, embed_size,
                         num_heads, n_layers)
    token_ids = jax.random.randint(jax.random.PRNGKey(0), (B, T), 0, vocab_size)

    fwd = jax.jit(lambda ids, p: transformer_upgraded_forward(ids, p, num_heads))
    logits, loss = fwd(token_ids, params)
    logits = jax.block_until_ready(logits)

    assert logits.shape == (B, T, vocab_size), logits.shape
    assert loss is None
    assert bool(jnp.all(jnp.isfinite(logits)))
    print("KERNEL_OK")
</pallas_src>

<mosaic_0001>
module attributes {stable_mosaic.version = 11 : i64} {
  func.func @_attn_block_kernel(%arg0: i32, %arg1: memref<1x8x32xf32, #tpu.memory_space<vmem>>, %arg2: memref<1x32xf32, #tpu.memory_space<vmem>>, %arg3: memref<1x32xf32, #tpu.memory_space<vmem>>, %arg4: memref<32x32xbf16, #tpu.memory_space<vmem>>, %arg5: memref<32x32xbf16, #tpu.memory_space<vmem>>, %arg6: memref<32x32xbf16, #tpu.memory_space<vmem>>, %arg7: memref<32x32xbf16, #tpu.memory_space<vmem>>, %arg8: memref<4x32x32xbf16, #tpu.memory_space<vmem>>, %arg9: memref<4x32x32xbf16, #tpu.memory_space<vmem>>, %arg10: memref<1x32xf32, #tpu.memory_space<vmem>>, %arg11: memref<8x32xf32, #tpu.memory_space<vmem>>, %arg12: memref<8x32xf32, #tpu.memory_space<vmem>>, %arg13: memref<8x8xf32, #tpu.memory_space<vmem>>, %arg14: memref<1x8x32xf32, #tpu.memory_space<vmem>>) attributes {dimension_semantics = [#tpu.dimension_semantics<parallel>], iteration_bounds = array<i64: 2>, scalar_prefetch = 0 : i64, scratch_operands = 0 : i64, tpu.core_type = #tpu.core_type<tc>, window_params = [{transform_indices = @transform_0, window_bounds = array<i64: 1, 8, 32>}, {pipeline_mode = #tpu.pipeline_mode<synchronous>, transform_indices = @transform_1, window_bounds = array<i64: 1, 32>}, {pipeline_mode = #tpu.pipeline_mode<synchronous>, transform_indices = @transform_2, window_bounds = array<i64: 1, 32>}, {pipeline_mode = #tpu.pipeline_mode<synchronous>, transform_indices = @transform_3, window_bounds = array<i64: 32, 32>}, {pipeline_mode = #tpu.pipeline_mode<synchronous>, transform_indices = @transform_4, window_bounds = array<i64: 32, 32>}, {pipeline_mode = #tpu.pipeline_mode<synchronous>, transform_indices = @transform_5, window_bounds = array<i64: 32, 32>}, {pipeline_mode = #tpu.pipeline_mode<synchronous>, transform_indices = @transform_6, window_bounds = array<i64: 32, 32>}, {pipeline_mode = #tpu.pipeline_mode<synchronous>, transform_indices = @transform_7, window_bounds = array<i64: 4, 32, 32>}, {pipeline_mode = #tpu.pipeline_mode<synchronous>, transform_indices = @transform_8, window_bounds = array<i64: 4, 32, 32>}, {pipeline_mode = #tpu.pipeline_mode<synchronous>, transform_indices = @transform_9, window_bounds = array<i64: 1, 32>}, {pipeline_mode = #tpu.pipeline_mode<synchronous>, transform_indices = @transform_10, window_bounds = array<i64: 8, 32>}, {pipeline_mode = #tpu.pipeline_mode<synchronous>, transform_indices = @transform_11, window_bounds = array<i64: 8, 32>}, {pipeline_mode = #tpu.pipeline_mode<synchronous>, transform_indices = @transform_12, window_bounds = array<i64: 8, 8>}, {transform_indices = @transform_13, window_bounds = array<i64: 1, 8, 32>}]} {
    %c0 = arith.constant 0 : index
    %c0_0 = arith.constant 0 : index
    %c0_1 = arith.constant 0 : index
    %0 = vector.load %arg1[%c0, %c0_0, %c0_1] : memref<1x8x32xf32, #tpu.memory_space<vmem>>, vector<1x8x32xf32>
    %1 = vector.shape_cast %0 : vector<1x8x32xf32> to vector<8x32xf32>
    %cst = arith.constant dense<0.000000e+00> : vector<8xf32>
    %2 = vector.multi_reduction <add>, %1, %cst [1] : vector<8x32xf32> to vector<8xf32>
    %3 = vector.shape_cast %2 : vector<8xf32> to vector<8x1xf32>
    %cst_2 = arith.constant 3.200000e+01 : f32
    %4 = vector.broadcast %cst_2 : f32 to vector<8x1xf32>
    %5 = arith.divf %3, %4 : vector<8x1xf32>
    %6 = vector.broadcast %5 : vector<8x1xf32> to vector<8x32xf32>
    %7 = arith.subf %1, %6 : vector<8x32xf32>
    %8 = arith.mulf %7, %7 : vector<8x32xf32>
    %cst_3 = arith.constant dense<0.000000e+00> : vector<8xf32>
    %9 = vector.multi_reduction <add>, %8, %cst_3 [1] : vector<8x32xf32> to vector<8xf32>
    %10 = vector.shape_cast %9 : vector<8xf32> to vector<8x1xf32>
    %cst_4 = arith.constant 3.200000e+01 : f32
    %11 = vector.broadcast %cst_4 : f32 to vector<8x1xf32>
    %12 = arith.divf %10, %11 : vector<8x1xf32>
    %13 = vector.broadcast %5 : vector<8x1xf32> to vector<8x32xf32>
    %14 = arith.subf %1, %13 : vector<8x32xf32>
    %cst_5 = arith.constant 9.99999974E-6 : f32
    %15 = vector.broadcast %cst_5 : f32 to vector<8x1xf32>
    %16 = arith.addf %12, %15 : vector<8x1xf32>
    %17 = math.rsqrt %16 : vector<8x1xf32>
    %18 = vector.broadcast %17 : vector<8x1xf32> to vector<8x32xf32>
    %19 = arith.mulf %14, %18 : vector<8x32xf32>
    %c0_6 = arith.constant 0 : index
    %c0_7 = arith.constant 0 : index
    %20 = vector.load %arg2[%c0_6, %c0_7] : memref<1x32xf32, #tpu.memory_space<vmem>>, vector<1x32xf32>
    %21 = vector.broadcast %20 : vector<1x32xf32> to vector<8x32xf32>
    %22 = arith.mulf %19, %21 : vector<8x32xf32>
    %c0_8 = arith.constant 0 : index
    %c0_9 = arith.constant 0 : index
    %23 = vector.load %arg3[%c0_8, %c0_9] : memref<1x32xf32, #tpu.memory_space<vmem>>, vector<1x32xf32>
    %24 = vector.broadcast %23 : vector<1x32xf32> to vector<8x32xf32>
    %25 = arith.addf %22, %24 : vector<8x32xf32>
    %26 = arith.truncf %25 : vector<8x32xf32> to vector<8x32xbf16>
    %c0_10 = arith.constant 0 : index
    %c0_11 = arith.constant 0 : index
    %27 = vector.load %arg11[%c0_10, %c0_11] : memref<8x32xf32, #tpu.memory_space<vmem>>, vector<8x32xf32>
    %c0_12 = arith.constant 0 : index
    %c0_13 = arith.constant 0 : index
    %28 = vector.load %arg12[%c0_12, %c0_13] : memref<8x32xf32, #tpu.memory_space<vmem>>, vector<8x32xf32>
    %c0_14 = arith.constant 0 : index
    %c0_15 = arith.constant 0 : index
    %29 = vector.load %arg4[%c0_14, %c0_15] : memref<32x32xbf16, #tpu.memory_space<vmem>>, vector<32x32xbf16>
    %cst_16 = arith.constant dense<0.000000e+00> : vector<8x32xf32>
    %30 = tpu.matmul %26, %29, %cst_16 {dimension_numbers = #tpu.dot_dimension_numbers<[1], [0], [0], [1], [0, 0, 1, 1], [], []>} : vector<8x32xbf16>, vector<32x32xbf16>, vector<8x32xf32> -> vector<8x32xf32>
    %31 = arith.mulf %30, %27 : vector<8x32xf32>
    %c0_17 = arith.constant 0 : index
    %c0_18 = arith.constant 0 : index
    %32 = vector.load %arg5[%c0_17, %c0_18] : memref<32x32xbf16, #tpu.memory_space<vmem>>, vector<32x32xbf16>
    %cst_19 = arith.constant dense<0.000000e+00> : vector<8x32xf32>
    %33 = tpu.matmul %26, %32, %cst_19 {dimension_numbers = #tpu.dot_dimension_numbers<[1], [0], [0], [1], [0, 0, 1, 1], [], []>} : vector<8x32xbf16>, vector<32x32xbf16>, vector<8x32xf32> -> vector<8x32xf32>
    %34 = arith.mulf %33, %28 : vector<8x32xf32>
    %35 = arith.addf %31, %34 : vector<8x32xf32>
    %cst_20 = arith.constant 0.353553385 : f32
    %36 = vector.broadcast %cst_20 : f32 to vector<8x32xf32>
    %37 = arith.mulf %35, %36 : vector<8x32xf32>
    %38 = arith.truncf %37 : vector<8x32xf32> to vector<8x32xbf16>
    %c0_21 = arith.constant 0 : index
    %c0_22 = arith.constant 0 : index
    %39 = vector.load %arg6[%c0_21, %c0_22] : memref<32x32xbf16, #tpu.memory_space<vmem>>, vector<32x32xbf16>
    %cst_23 = arith.constant dense<0.000000e+00> : vector<8x32xf32>
    %40 = tpu.matmul %26, %39, %cst_23 {dimension_numbers = #tpu.dot_dimension_numbers<[1], [0], [0], [1], [0, 0, 1, 1], [], []>} : vector<8x32xbf16>, vector<32x32xbf16>, vector<8x32xf32> -> vector<8x32xf32>
    %41 = arith.mulf %40, %27 : vector<8x32xf32>
    %c0_24 = arith.constant 0 : index
    %c0_25 = arith.constant 0 : index
    %42 = vector.load %arg7[%c0_24, %c0_25] : memref<32x32xbf16, #tpu.memory_space<vmem>>, vector<32x32xbf16>
    %cst_26 = arith.constant dense<0.000000e+00> : vector<8x32xf32>
    %43 = tpu.matmul %26, %42, %cst_26 {dimension_numbers = #tpu.dot_dimension_numbers<[1], [0], [0], [1], [0, 0, 1, 1], [], []>} : vector<8x32xbf16>, vector<32x32xbf16>, vector<8x32xf32> -> vector<8x32xf32>
    %44 = arith.mulf %43, %28 : vector<8x32xf32>
    %45 = arith.addf %41, %44 : vector<8x32xf32>
    %46 = arith.truncf %45 : vector<8x32xf32> to vector<8x32xbf16>
    %c0_27 = arith.constant 0 : index
    %c0_28 = arith.constant 0 : index
    %47 = vector.load %arg13[%c0_27, %c0_28] : memref<8x8xf32, #tpu.memory_space<vmem>>, vector<8x8xf32>
    %c0_29 = arith.constant 0 : index
    %c0_30 = arith.constant 0 : index
    %48 = vector.load %arg10[%c0_29, %c0_30] : memref<1x32xf32, #tpu.memory_space<vmem>>, vector<1x32xf32>
    %49 = vector.broadcast %48 : vector<1x32xf32> to vector<8x32xf32>
    %50 = arith.addf %1, %49 : vector<8x32xf32>
    %51 = vector.extract_strided_slice %38 {offsets = [0, 0], sizes = [8, 8], strides = [1, 1]} : vector<8x32xbf16> to vector<8x8xbf16>
    %52 = vector.extract_strided_slice %46 {offsets = [0, 0], sizes = [8, 8], strides = [1, 1]} : vector<8x32xbf16> to vector<8x8xbf16>
    %cst_31 = arith.constant dense<0.000000e+00> : vector<8x8xf32>
    %53 = tpu.matmul %51, %52, %cst_31 {dimension_numbers = #tpu.dot_dimension_numbers<[1], [1], [0], [0], [0, 0, 1, 0], [], []>} : vector<8x8xbf16>, vector<8x8xbf16>, vector<8x8xf32> -> vector<8x8xf32>
    %54 = arith.addf %53, %47 : vector<8x8xf32>
    %cst_32 = arith.constant dense<0xFF800000> : vector<8xf32>
    %55 = vector.multi_reduction <maximumf>, %54, %cst_32 [1] : vector<8x8xf32> to vector<8xf32>
    %56 = vector.shape_cast %55 : vector<8xf32> to vector<8x1xf32>
    %57 = vector.broadcast %56 : vector<8x1xf32> to vector<8x8xf32>
    %58 = arith.subf %54, %57 : vector<8x8xf32>
    %59 = math.exp %58 : vector<8x8xf32>
    %cst_33 = arith.constant dense<0.000000e+00> : vector<8xf32>
    %60 = vector.multi_reduction <add>, %59, %cst_33 [1] : vector<8x8xf32> to vector<8xf32>
    %61 = vector.shape_cast %60 : vector<8xf32> to vector<8x1xf32>
    %62 = tpu.reciprocal %61 {approx = true} : vector<8x1xf32> -> vector<8x1xf32>
    %63 = vector.broadcast %62 : vector<8x1xf32> to vector<8x8xf32>
    %64 = arith.mulf %59, %63 : vector<8x8xf32>
    %65 = arith.truncf %64 : vector<8x8xf32> to vector<8x8xbf16>
    %c0_34 = arith.constant 0 : index
    %c0_35 = arith.constant 0 : index
    %c0_36 = arith.constant 0 : index
    %66 = vector.load %arg8[%c0_34, %c0_35, %c0_36] : memref<4x32x32xbf16, #tpu.memory_space<vmem>>, vector<1x32x32xbf16>
    %67 = vector.shape_cast %66 : vector<1x32x32xbf16> to vector<32x32xbf16>
    %cst_37 = arith.constant dense<0.000000e+00> : vector<8x32xf32>
    %68 = tpu.matmul %26, %67, %cst_37 {dimension_numbers = #tpu.dot_dimension_numbers<[1], [0], [0], [1], [0, 0, 1, 1], [], []>} : vector<8x32xbf16>, vector<32x32xbf16>, vector<8x32xf32> -> vector<8x32xf32>
    %69 = arith.truncf %68 : vector<8x32xf32> to vector<8x32xbf16>
    %cst_38 = arith.constant dense<0.000000e+00> : vector<8x32xf32>
    %70 = tpu.matmul %65, %69, %cst_38 {dimension_numbers = #tpu.dot_dimension_numbers<[1], [0], [0], [1], [0, 0, 1, 1], [], []>} : vector<8x8xbf16>, vector<8x32xbf16>, vector<8x32xf32> -> vector<8x32xf32>
    %71 = arith.truncf %70 : vector<8x32xf32> to vector<8x32xbf16>
    %c0_39 = arith.constant 0 : index
    %c0_40 = arith.constant 0 : index
    %c0_41 = arith.constant 0 : index
    %72 = vector.load %arg9[%c0_39, %c0_40, %c0_41] : memref<4x32x32xbf16, #tpu.memory_space<vmem>>, vector<1x32x32xbf16>
    %73 = vector.shape_cast %72 : vector<1x32x32xbf16> to vector<32x32xbf16>
    %cst_42 = arith.constant dense<0.000000e+00> : vector<8x32xf32>
    %74 = tpu.matmul %71, %73, %cst_42 {dimension_numbers = #tpu.dot_dimension_numbers<[1], [0], [0], [1], [0, 0, 1, 1], [], []>} : vector<8x32xbf16>, vector<32x32xbf16>, vector<8x32xf32> -> vector<8x32xf32>
    %75 = arith.addf %50, %74 : vector<8x32xf32>
    %76 = vector.extract_strided_slice %38 {offsets = [0, 8], sizes = [8, 8], strides = [1, 1]} : vector<8x32xbf16> to vector<8x8xbf16>
    %77 = vector.extract_strided_slice %46 {offsets = [0, 8], sizes = [8, 8], strides = [1, 1]} : vector<8x32xbf16> to vector<8x8xbf16>
    %cst_43 = arith.constant dense<0.000000e+00> : vector<8x8xf32>
    %78 = tpu.matmul %76, %77, %cst_43 {dimension_numbers = #tpu.dot_dimension_numbers<[1], [1], [0], [0], [0, 0, 1, 0], [], []>} : vector<8x8xbf16>, vector<8x8xbf16>, vector<8x8xf32> -> vector<8x8xf32>
    %79 = arith.addf %78, %47 : vector<8x8xf32>
    %cst_44 = arith.constant dense<0xFF800000> : vector<8xf32>
    %80 = vector.multi_reduction <maximumf>, %79, %cst_44 [1] : vector<8x8xf32> to vector<8xf32>
    %81 = vector.shape_cast %80 : vector<8xf32> to vector<8x1xf32>
    %82 = vector.broadcast %81 : vector<8x1xf32> to vector<8x8xf32>
    %83 = arith.subf %79, %82 : vector<8x8xf32>
    %84 = math.exp %83 : vector<8x8xf32>
    %cst_45 = arith.constant dense<0.000000e+00> : vector<8xf32>
    %85 = vector.multi_reduction <add>, %84, %cst_45 [1] : vector<8x8xf32> to vector<8xf32>
    %86 = vector.shape_cast %85 : vector<8xf32> to vector<8x1xf32>
    %87 = tpu.reciprocal %86 {approx = true} : vector<8x1xf32> -> vector<8x1xf32>
    %88 = vector.broadcast %87 : vector<8x1xf32> to vector<8x8xf32>
    %89 = arith.mulf %84, %88 : vector<8x8xf32>
    %90 = arith.truncf %89 : vector<8x8xf32> to vector<8x8xbf16>
    %c1 = arith.constant 1 : index
    %c0_46 = arith.constant 0 : index
    %c0_47 = arith.constant 0 : index
    %91 = vector.load %arg8[%c1, %c0_46, %c0_47] : memref<4x32x32xbf16, #tpu.memory_space<vmem>>, vector<1x32x32xbf16>
    %92 = vector.shape_cast %91 : vector<1x32x32xbf16> to vector<32x32xbf16>
    %cst_48 = arith.constant dense<0.000000e+00> : vector<8x32xf32>
    %93 = tpu.matmul %26, %92, %cst_48 {dimension_numbers = #tpu.dot_dimension_numbers<[1], [0], [0], [1], [0, 0, 1, 1], [], []>} : vector<8x32xbf16>, vector<32x32xbf16>, vector<8x32xf32> -> vector<8x32xf32>
    %94 = arith.truncf %93 : vector<8x32xf32> to vector<8x32xbf16>
    %cst_49 = arith.constant dense<0.000000e+00> : vector<8x32xf32>
    %95 = tpu.matmul %90, %94, %cst_49 {dimension_numbers = #tpu.dot_dimension_numbers<[1], [0], [0], [1], [0, 0, 1, 1], [], []>} : vector<8x8xbf16>, vector<8x32xbf16>, vector<8x32xf32> -> vector<8x32xf32>
    %96 = arith.truncf %95 : vector<8x32xf32> to vector<8x32xbf16>
    %c1_50 = arith.constant 1 : index
    %c0_51 = arith.constant 0 : index
    %c0_52 = arith.constant 0 : index
    %97 = vector.load %arg9[%c1_50, %c0_51, %c0_52] : memref<4x32x32xbf16, #tpu.memory_space<vmem>>, vector<1x32x32xbf16>
    %98 = vector.shape_cast %97 : vector<1x32x32xbf16> to vector<32x32xbf16>
    %cst_53 = arith.constant dense<0.000000e+00> : vector<8x32xf32>
    %99 = tpu.matmul %96, %98, %cst_53 {dimension_numbers = #tpu.dot_dimension_numbers<[1], [0], [0], [1], [0, 0, 1, 1], [], []>} : vector<8x32xbf16>, vector<32x32xbf16>, vector<8x32xf32> -> vector<8x32xf32>
    %100 = arith.addf %75, %99 : vector<8x32xf32>
    %101 = vector.extract_strided_slice %38 {offsets = [0, 16], sizes = [8, 8], strides = [1, 1]} : vector<8x32xbf16> to vector<8x8xbf16>
    %102 = vector.extract_strided_slice %46 {offsets = [0, 16], sizes = [8, 8], strides = [1, 1]} : vector<8x32xbf16> to vector<8x8xbf16>
    %cst_54 = arith.constant dense<0.000000e+00> : vector<8x8xf32>
    %103 = tpu.matmul %101, %102, %cst_54 {dimension_numbers = #tpu.dot_dimension_numbers<[1], [1], [0], [0], [0, 0, 1, 0], [], []>} : vector<8x8xbf16>, vector<8x8xbf16>, vector<8x8xf32> -> vector<8x8xf32>
    %104 = arith.addf %103, %47 : vector<8x8xf32>
    %cst_55 = arith.constant dense<0xFF800000> : vector<8xf32>
    %105 = vector.multi_reduction <maximumf>, %104, %cst_55 [1] : vector<8x8xf32> to vector<8xf32>
    %106 = vector.shape_cast %105 : vector<8xf32> to vector<8x1xf32>
    %107 = vector.broadcast %106 : vector<8x1xf32> to vector<8x8xf32>
    %108 = arith.subf %104, %107 : vector<8x8xf32>
    %109 = math.exp %108 : vector<8x8xf32>
    %cst_56 = arith.constant dense<0.000000e+00> : vector<8xf32>
    %110 = vector.multi_reduction <add>, %109, %cst_56 [1] : vector<8x8xf32> to vector<8xf32>
    %111 = vector.shape_cast %110 : vector<8xf32> to vector<8x1xf32>
    %112 = tpu.reciprocal %111 {approx = true} : vector<8x1xf32> -> vector<8x1xf32>
    %113 = vector.broadcast %112 : vector<8x1xf32> to vector<8x8xf32>
    %114 = arith.mulf %109, %113 : vector<8x8xf32>
    %115 = arith.truncf %114 : vector<8x8xf32> to vector<8x8xbf16>
    %c2 = arith.constant 2 : index
    %c0_57 = arith.constant 0 : index
    %c0_58 = arith.constant 0 : index
    %116 = vector.load %arg8[%c2, %c0_57, %c0_58] : memref<4x32x32xbf16, #tpu.memory_space<vmem>>, vector<1x32x32xbf16>
    %117 = vector.shape_cast %116 : vector<1x32x32xbf16> to vector<32x32xbf16>
    %cst_59 = arith.constant dense<0.000000e+00> : vector<8x32xf32>
    %118 = tpu.matmul %26, %117, %cst_59 {dimension_numbers = #tpu.dot_dimension_numbers<[1], [0], [0], [1], [0, 0, 1, 1], [], []>} : vector<8x32xbf16>, vector<32x32xbf16>, vector<8x32xf32> -> vector<8x32xf32>
    %119 = arith.truncf %118 : vector<8x32xf32> to vector<8x32xbf16>
    %cst_60 = arith.constant dense<0.000000e+00> : vector<8x32xf32>
    %120 = tpu.matmul %115, %119, %cst_60 {dimension_numbers = #tpu.dot_dimension_numbers<[1], [0], [0], [1], [0, 0, 1, 1], [], []>} : vector<8x8xbf16>, vector<8x32xbf16>, vector<8x32xf32> -> vector<8x32xf32>
    %121 = arith.truncf %120 : vector<8x32xf32> to vector<8x32xbf16>
    %c2_61 = arith.constant 2 : index
    %c0_62 = arith.constant 0 : index
    %c0_63 = arith.constant 0 : index
    %122 = vector.load %arg9[%c2_61, %c0_62, %c0_63] : memref<4x32x32xbf16, #tpu.memory_space<vmem>>, vector<1x32x32xbf16>
    %123 = vector.shape_cast %122 : vector<1x32x32xbf16> to vector<32x32xbf16>
    %cst_64 = arith.constant dense<0.000000e+00> : vector<8x32xf32>
    %124 = tpu.matmul %121, %123, %cst_64 {dimension_numbers = #tpu.dot_dimension_numbers<[1], [0], [0], [1], [0, 0, 1, 1], [], []>} : vector<8x32xbf16>, vector<32x32xbf16>, vector<8x32xf32> -> vector<8x32xf32>
    %125 = arith.addf %100, %124 : vector<8x32xf32>
    %126 = vector.extract_strided_slice %38 {offsets = [0, 24], sizes = [8, 8], strides = [1, 1]} : vector<8x32xbf16> to vector<8x8xbf16>
    %127 = vector.extract_strided_slice %46 {offsets = [0, 24], sizes = [8, 8], strides = [1, 1]} : vector<8x32xbf16> to vector<8x8xbf16>
    %cst_65 = arith.constant dense<0.000000e+00> : vector<8x8xf32>
    %128 = tpu.matmul %126, %127, %cst_65 {dimension_numbers = #tpu.dot_dimension_numbers<[1], [1], [0], [0], [0, 0, 1, 0], [], []>} : vector<8x8xbf16>, vector<8x8xbf16>, vector<8x8xf32> -> vector<8x8xf32>
    %129 = arith.addf %128, %47 : vector<8x8xf32>
    %cst_66 = arith.constant dense<0xFF800000> : vector<8xf32>
    %130 = vector.multi_reduction <maximumf>, %129, %cst_66 [1] : vector<8x8xf32> to vector<8xf32>
    %131 = vector.shape_cast %130 : vector<8xf32> to vector<8x1xf32>
    %132 = vector.broadcast %131 : vector<8x1xf32> to vector<8x8xf32>
    %133 = arith.subf %129, %132 : vector<8x8xf32>
    %134 = math.exp %133 : vector<8x8xf32>
    %cst_67 = arith.constant dense<0.000000e+00> : vector<8xf32>
    %135 = vector.multi_reduction <add>, %134, %cst_67 [1] : vector<8x8xf32> to vector<8xf32>
    %136 = vector.shape_cast %135 : vector<8xf32> to vector<8x1xf32>
    %137 = tpu.reciprocal %136 {approx = true} : vector<8x1xf32> -> vector<8x1xf32>
    %138 = vector.broadcast %137 : vector<8x1xf32> to vector<8x8xf32>
    %139 = arith.mulf %134, %138 : vector<8x8xf32>
    %140 = arith.truncf %139 : vector<8x8xf32> to vector<8x8xbf16>
    %c3 = arith.constant 3 : index
    %c0_68 = arith.constant 0 : index
    %c0_69 = arith.constant 0 : index
    %141 = vector.load %arg8[%c3, %c0_68, %c0_69] : memref<4x32x32xbf16, #tpu.memory_space<vmem>>, vector<1x32x32xbf16>
    %142 = vector.shape_cast %141 : vector<1x32x32xbf16> to vector<32x32xbf16>
    %cst_70 = arith.constant dense<0.000000e+00> : vector<8x32xf32>
    %143 = tpu.matmul %26, %142, %cst_70 {dimension_numbers = #tpu.dot_dimension_numbers<[1], [0], [0], [1], [0, 0, 1, 1], [], []>} : vector<8x32xbf16>, vector<32x32xbf16>, vector<8x32xf32> -> vector<8x32xf32>
    %144 = arith.truncf %143 : vector<8x32xf32> to vector<8x32xbf16>
    %cst_71 = arith.constant dense<0.000000e+00> : vector<8x32xf32>
    %145 = tpu.matmul %140, %144, %cst_71 {dimension_numbers = #tpu.dot_dimension_numbers<[1], [0], [0], [1], [0, 0, 1, 1], [], []>} : vector<8x8xbf16>, vector<8x32xbf16>, vector<8x32xf32> -> vector<8x32xf32>
    %146 = arith.truncf %145 : vector<8x32xf32> to vector<8x32xbf16>
    %c3_72 = arith.constant 3 : index
    %c0_73 = arith.constant 0 : index
    %c0_74 = arith.constant 0 : index
    %147 = vector.load %arg9[%c3_72, %c0_73, %c0_74] : memref<4x32x32xbf16, #tpu.memory_space<vmem>>, vector<1x32x32xbf16>
    %148 = vector.shape_cast %147 : vector<1x32x32xbf16> to vector<32x32xbf16>
    %cst_75 = arith.constant dense<0.000000e+00> : vector<8x32xf32>
    %149 = tpu.matmul %146, %148, %cst_75 {dimension_numbers = #tpu.dot_dimension_numbers<[1], [0], [0], [1], [0, 0, 1, 1], [], []>} : vector<8x32xbf16>, vector<32x32xbf16>, vector<8x32xf32> -> vector<8x32xf32>
    %150 = arith.addf %125, %149 : vector<8x32xf32>
    %c0_76 = arith.constant 0 : index
    %c0_77 = arith.constant 0 : index
    %c0_78 = arith.constant 0 : index
    %151 = vector.load %arg14[%c0_76, %c0_77, %c0_78] : memref<1x8x32xf32, #tpu.memory_space<vmem>>, vector<1x8x32xf32>
    %152 = vector.shape_cast %151 : vector<1x8x32xf32> to vector<8x32xf32>
    %153 = vector.shape_cast %150 : vector<8x32xf32> to vector<1x8x32xf32>
    tpu.vector_store %arg14[%c0_76, %c0_77, %c0_78], %153 {strides = array<i32>} : memref<1x8x32xf32, #tpu.memory_space<vmem>>, vector<1x8x32xf32>,
    return
  }
  func.func @transform_0(%arg0: i32) -> (i32, i32, i32) {
    %c0_i32 = arith.constant 0 : i32
    %c0_i32_0 = arith.constant 0 : i32
    %c0_i32_1 = arith.constant 0 : i32
    return %arg0, %c0_i32, %c0_i32_0 : i32, i32, i32
  }
  func.func @transform_1(%arg0: i32) -> (i32, i32) {
    %c0_i32 = arith.constant 0 : i32
    %c0_i32_0 = arith.constant 0 : i32
    %c0_i32_1 = arith.constant 0 : i32
    return %c0_i32, %c0_i32_0 : i32, i32
  }
  func.func @transform_2(%arg0: i32) -> (i32, i32) {
    %c0_i32 = arith.constant 0 : i32
    %c0_i32_0 = arith.constant 0 : i32
    %c0_i32_1 = arith.constant 0 : i32
    return %c0_i32, %c0_i32_0 : i32, i32
  }
  func.func @transform_3(%arg0: i32) -> (i32, i32) {
    %c0_i32 = arith.constant 0 : i32
    %c0_i32_0 = arith.constant 0 : i32
    %c0_i32_1 = arith.constant 0 : i32
    return %c0_i32, %c0_i32_0 : i32, i32
  }
  func.func @transform_4(%arg0: i32) -> (i32, i32) {
    %c0_i32 = arith.constant 0 : i32
    %c0_i32_0 = arith.constant 0 : i32
    %c0_i32_1 = arith.constant 0 : i32
    return %c0_i32, %c0_i32_0 : i32, i32
  }
  func.func @transform_5(%arg0: i32) -> (i32, i32) {
    %c0_i32 = arith.constant 0 : i32
    %c0_i32_0 = arith.constant 0 : i32
    %c0_i32_1 = arith.constant 0 : i32
    return %c0_i32, %c0_i32_0 : i32, i32
  }
  func.func @transform_6(%arg0: i32) -> (i32, i32) {
    %c0_i32 = arith.constant 0 : i32
    %c0_i32_0 = arith.constant 0 : i32
    %c0_i32_1 = arith.constant 0 : i32
    return %c0_i32, %c0_i32_0 : i32, i32
  }
  func.func @transform_7(%arg0: i32) -> (i32, i32, i32) {
    %c0_i32 = arith.constant 0 : i32
    %c0_i32_0 = arith.constant 0 : i32
    %c0_i32_1 = arith.constant 0 : i32
    %c0_i32_2 = arith.constant 0 : i32
    return %c0_i32, %c0_i32_0, %c0_i32_1 : i32, i32, i32
  }
  func.func @transform_8(%arg0: i32) -> (i32, i32, i32) {
    %c0_i32 = arith.constant 0 : i32
    %c0_i32_0 = arith.constant 0 : i32
    %c0_i32_1 = arith.constant 0 : i32
    %c0_i32_2 = arith.constant 0 : i32
    return %c0_i32, %c0_i32_0, %c0_i32_1 : i32, i32, i32
  }
  func.func @transform_9(%arg0: i32) -> (i32, i32) {
    %c0_i32 = arith.constant 0 : i32
    %c0_i32_0 = arith.constant 0 : i32
    %c0_i32_1 = arith.constant 0 : i32
    return %c0_i32, %c0_i32_0 : i32, i32
  }
  func.func @transform_10(%arg0: i32) -> (i32, i32) {
    %c0_i32 = arith.constant 0 : i32
    %c0_i32_0 = arith.constant 0 : i32
    %c0_i32_1 = arith.constant 0 : i32
    return %c0_i32, %c0_i32_0 : i32, i32
  }
  func.func @transform_11(%arg0: i32) -> (i32, i32) {
    %c0_i32 = arith.constant 0 : i32
    %c0_i32_0 = arith.constant 0 : i32
    %c0_i32_1 = arith.constant 0 : i32
    return %c0_i32, %c0_i32_0 : i32, i32
  }
  func.func @transform_12(%arg0: i32) -> (i32, i32) {
    %c0_i32 = arith.constant 0 : i32
    %c0_i32_0 = arith.constant 0 : i32
    %c0_i32_1 = arith.constant 0 : i32
    return %c0_i32, %c0_i32_0 : i32, i32
  }
  func.func @transform_13(%arg0: i32) -> (i32, i32, i32) {
    %c0_i32 = arith.constant 0 : i32
    %c0_i32_0 = arith.constant 0 : i32
    %c0_i32_1 = arith.constant 0 : i32
    return %arg0, %c0_i32, %c0_i32_0 : i32, i32, i32
  }
}

module attributes {stable_mosaic.version = 11 : i64} {
  func.func @_ln_linear_kernel(%arg0: i32, %arg1: i32, %arg2: memref<16x32xf32, #tpu.memory_space<vmem>>, %arg3: memref<1x32xf32, #tpu.memory_space<vmem>>, %arg4: memref<1x32xf32, #tpu.memory_space<vmem>>, %arg5: memref<32x64xbf16, #tpu.memory_space<vmem>>, %arg6: memref<1x64xf32, #tpu.memory_space<vmem>>, %arg7: memref<16x64xf32, #tpu.memory_space<vmem>>, %arg8: memref<16x32xbf16, #tpu.memory_space<vmem>>) attributes {dimension_semantics = [#tpu.dimension_semantics<parallel>, #tpu.dimension_semantics<arbitrary>], iteration_bounds = array<i64: 1, 1>, scalar_prefetch = 0 : i64, scratch_operands = 1 : i64, tpu.core_type = #tpu.core_type<tc>, window_params = [{transform_indices = @transform_0, window_bounds = array<i64: 16, 32>}, {pipeline_mode = #tpu.pipeline_mode<synchronous>, transform_indices = @transform_1, window_bounds = array<i64: 1, 32>}, {pipeline_mode = #tpu.pipeline_mode<synchronous>, transform_indices = @transform_2, window_bounds = array<i64: 1, 32>}, {transform_indices = @transform_3, window_bounds = array<i64: 32, 64>}, {transform_indices = @transform_4, window_bounds = array<i64: 1, 64>}, {transform_indices = @transform_5, window_bounds = array<i64: 16, 64>}]} {
    %c0_i32 = arith.constant 0 : i32
    %0 = arith.cmpi eq, %arg1, %c0_i32 : i32
    %1 = arith.extui %0 : i1 to i32
    %c0_i32_0 = arith.constant 0 : i32
    %2 = arith.cmpi ne, %1, %c0_i32_0 : i32
    scf.if %2 {
      %c0_8 = arith.constant 0 : index
      %c0_9 = arith.constant 0 : index
      %10 = vector.load %arg2[%c0_8, %c0_9] : memref<16x32xf32, #tpu.memory_space<vmem>>, vector<16x32xf32>
      %cst_10 = arith.constant dense<0.000000e+00> : vector<16xf32>
      %11 = vector.multi_reduction <add>, %10, %cst_10 [1] : vector<16x32xf32> to vector<16xf32>
      %12 = vector.shape_cast %11 : vector<16xf32> to vector<16x1xf32>
      %cst_11 = arith.constant 3.200000e+01 : f32
      %13 = vector.broadcast %cst_11 : f32 to vector<16x1xf32>
      %14 = arith.divf %12, %13 : vector<16x1xf32>
      %15 = vector.broadcast %14 : vector<16x1xf32> to vector<16x32xf32>
      %16 = arith.subf %10, %15 : vector<16x32xf32>
      %17 = arith.mulf %16, %16 : vector<16x32xf32>
      %cst_12 = arith.constant dense<0.000000e+00> : vector<16xf32>
      %18 = vector.multi_reduction <add>, %17, %cst_12 [1] : vector<16x32xf32> to vector<16xf32>
      %19 = vector.shape_cast %18 : vector<16xf32> to vector<16x1xf32>
      %cst_13 = arith.constant 3.200000e+01 : f32
      %20 = vector.broadcast %cst_13 : f32 to vector<16x1xf32>
      %21 = arith.divf %19, %20 : vector<16x1xf32>
      %22 = vector.broadcast %14 : vector<16x1xf32> to vector<16x32xf32>
      %23 = arith.subf %10, %22 : vector<16x32xf32>
      %cst_14 = arith.constant 9.99999974E-6 : f32
      %24 = vector.broadcast %cst_14 : f32 to vector<16x1xf32>
      %25 = arith.addf %21, %24 : vector<16x1xf32>
      %26 = math.rsqrt %25 : vector<16x1xf32>
      %27 = vector.broadcast %26 : vector<16x1xf32> to vector<16x32xf32>
      %28 = arith.mulf %23, %27 : vector<16x32xf32>
      %c0_15 = arith.constant 0 : index
      %c0_16 = arith.constant 0 : index
      %29 = vector.load %arg3[%c0_15, %c0_16] : memref<1x32xf32, #tpu.memory_space<vmem>>, vector<1x32xf32>
      %30 = vector.broadcast %29 : vector<1x32xf32> to vector<16x32xf32>
      %31 = arith.mulf %28, %30 : vector<16x32xf32>
      %c0_17 = arith.constant 0 : index
      %c0_18 = arith.constant 0 : index
      %32 = vector.load %arg4[%c0_17, %c0_18] : memref<1x32xf32, #tpu.memory_space<vmem>>, vector<1x32xf32>
      %33 = vector.broadcast %32 : vector<1x32xf32> to vector<16x32xf32>
      %34 = arith.addf %31, %33 : vector<16x32xf32>
      %35 = arith.truncf %34 : vector<16x32xf32> to vector<16x32xbf16>
      %c0_19 = arith.constant 0 : index
      %c0_20 = arith.constant 0 : index
      %36 = vector.load %arg8[%c0_19, %c0_20] : memref<16x32xbf16, #tpu.memory_space<vmem>>, vector<16x32xbf16>
      tpu.vector_store %arg8[%c0_19, %c0_20], %35 {strides = array<i32>} : memref<16x32xbf16, #tpu.memory_space<vmem>>, vector<16x32xbf16>,
    } else {
    }
    %c0 = arith.constant 0 : index
    %c0_1 = arith.constant 0 : index
    %3 = vector.load %arg8[%c0, %c0_1] : memref<16x32xbf16, #tpu.memory_space<vmem>>, vector<16x32xbf16>
    %c0_2 = arith.constant 0 : index
    %c0_3 = arith.constant 0 : index
    %4 = vector.load %arg5[%c0_2, %c0_3] : memref<32x64xbf16, #tpu.memory_space<vmem>>, vector<32x64xbf16>
    %cst = arith.constant dense<0.000000e+00> : vector<16x64xf32>
    %5 = tpu.matmul %3, %4, %cst {dimension_numbers = #tpu.dot_dimension_numbers<[1], [0], [0], [1], [0, 0, 1, 1], [], []>} : vector<16x32xbf16>, vector<32x64xbf16>, vector<16x64xf32> -> vector<16x64xf32>
    %c0_4 = arith.constant 0 : index
    %c0_5 = arith.constant 0 : index
    %6 = vector.load %arg6[%c0_4, %c0_5] : memref<1x64xf32, #tpu.memory_space<vmem>>, vector<1x64xf32>
    %7 = vector.broadcast %6 : vector<1x64xf32> to vector<16x64xf32>
    %8 = arith.addf %5, %7 : vector<16x64xf32>
    %c0_6 = arith.constant 0 : index
    %c0_7 = arith.constant 0 : index
    %9 = vector.load %arg7[%c0_6, %c0_7] : memref<16x64xf32, #tpu.memory_space<vmem>>, vector<16x64xf32>
    tpu.vector_store %arg7[%c0_6, %c0_7], %8 {strides = array<i32>} : memref<16x64xf32, #tpu.memory_space<vmem>>, vector<16x64xf32>,
    return
  }
  func.func @transform_0(%arg0: i32, %arg1: i32) -> (i32, i32) {
    %c0_i32 = arith.constant 0 : i32
    %c0_i32_0 = arith.constant 0 : i32
    return %arg0, %c0_i32 : i32, i32
  }
  func.func @transform_1(%arg0: i32, %arg1: i32) -> (i32, i32) {
    %c0_i32 = arith.constant 0 : i32
    %c0_i32_0 = arith.constant 0 : i32
    %c0_i32_1 = arith.constant 0 : i32
    return %c0_i32, %c0_i32_0 : i32, i32
  }
  func.func @transform_2(%arg0: i32, %arg1: i32) -> (i32, i32) {
    %c0_i32 = arith.constant 0 : i32
    %c0_i32_0 = arith.constant 0 : i32
    %c0_i32_1 = arith.constant 0 : i32
    return %c0_i32, %c0_i32_0 : i32, i32
  }
  func.func @transform_3(%arg0: i32, %arg1: i32) -> (i32, i32) {
    %c0_i32 = arith.constant 0 : i32
    %c0_i32_0 = arith.constant 0 : i32
    return %c0_i32, %arg1 : i32, i32
  }
  func.func @transform_4(%arg0: i32, %arg1: i32) -> (i32, i32) {
    %c0_i32 = arith.constant 0 : i32
    %c0_i32_0 = arith.constant 0 : i32
    return %c0_i32, %arg1 : i32, i32
  }
  func.func @transform_5(%arg0: i32, %arg1: i32) -> (i32, i32) {
    %c0_i32 = arith.constant 0 : i32
    return %arg0, %arg1 : i32, i32
  }
}

module attributes {stable_mosaic.version = 11 : i64} {
  func.func @_ffn_block_kernel(%arg0: i32, %arg1: i32, %arg2: memref<16x32xf32, #tpu.memory_space<vmem>>, %arg3: memref<1x32xf32, #tpu.memory_space<vmem>>, %arg4: memref<1x32xf32, #tpu.memory_space<vmem>>, %arg5: memref<32x128xbf16, #tpu.memory_space<vmem>>, %arg6: memref<1x128xf32, #tpu.memory_space<vmem>>, %arg7: memref<128x32xbf16, #tpu.memory_space<vmem>>, %arg8: memref<1x32xf32, #tpu.memory_space<vmem>>, %arg9: memref<16x32xf32, #tpu.memory_space<vmem>>, %arg10: memref<16x32xf32, #tpu.memory_space<vmem>>, %arg11: memref<16x32xbf16, #tpu.memory_space<vmem>>) attributes {dimension_semantics = [#tpu.dimension_semantics<parallel>, #tpu.dimension_semantics<arbitrary>], iteration_bounds = array<i64: 1, 1>, scalar_prefetch = 0 : i64, scratch_operands = 2 : i64, tpu.core_type = #tpu.core_type<tc>, window_params = [{transform_indices = @transform_0, window_bounds = array<i64: 16, 32>}, {pipeline_mode = #tpu.pipeline_mode<synchronous>, transform_indices = @transform_1, window_bounds = array<i64: 1, 32>}, {pipeline_mode = #tpu.pipeline_mode<synchronous>, transform_indices = @transform_2, window_bounds = array<i64: 1, 32>}, {transform_indices = @transform_3, window_bounds = array<i64: 32, 128>}, {transform_indices = @transform_4, window_bounds = array<i64: 1, 128>}, {transform_indices = @transform_5, window_bounds = array<i64: 128, 32>}, {pipeline_mode = #tpu.pipeline_mode<synchronous>, transform_indices = @transform_6, window_bounds = array<i64: 1, 32>}, {transform_indices = @transform_7, window_bounds = array<i64: 16, 32>}]} {
    %c0_i32 = arith.constant 0 : i32
    %0 = arith.cmpi eq, %arg1, %c0_i32 : i32
    %1 = arith.extui %0 : i1 to i32
    %c0_i32_0 = arith.constant 0 : i32
    %2 = arith.cmpi ne, %1, %c0_i32_0 : i32
    scf.if %2 {
      %cst_16 = arith.constant 0.000000e+00 : f32
      %20 = vector.broadcast %cst_16 : f32 to vector<16x32xf32>
      %c0_17 = arith.constant 0 : index
      %c0_18 = arith.constant 0 : index
      %21 = vector.load %arg10[%c0_17, %c0_18] : memref<16x32xf32, #tpu.memory_space<vmem>>, vector<16x32xf32>
      tpu.vector_store %arg10[%c0_17, %c0_18], %20 {strides = array<i32>} : memref<16x32xf32, #tpu.memory_space<vmem>>, vector<16x32xf32>,
      %c0_19 = arith.constant 0 : index
      %c0_20 = arith.constant 0 : index
      %22 = vector.load %arg2[%c0_19, %c0_20] : memref<16x32xf32, #tpu.memory_space<vmem>>, vector<16x32xf32>
      %cst_21 = arith.constant dense<0.000000e+00> : vector<16xf32>
      %23 = vector.multi_reduction <add>, %22, %cst_21 [1] : vector<16x32xf32> to vector<16xf32>
      %24 = vector.shape_cast %23 : vector<16xf32> to vector<16x1xf32>
      %cst_22 = arith.constant 3.200000e+01 : f32
      %25 = vector.broadcast %cst_22 : f32 to vector<16x1xf32>
      %26 = arith.divf %24, %25 : vector<16x1xf32>
      %27 = vector.broadcast %26 : vector<16x1xf32> to vector<16x32xf32>
      %28 = arith.subf %22, %27 : vector<16x32xf32>
      %29 = arith.mulf %28, %28 : vector<16x32xf32>
      %cst_23 = arith.constant dense<0.000000e+00> : vector<16xf32>
      %30 = vector.multi_reduction <add>, %29, %cst_23 [1] : vector<16x32xf32> to vector<16xf32>
      %31 = vector.shape_cast %30 : vector<16xf32> to vector<16x1xf32>
      %cst_24 = arith.constant 3.200000e+01 : f32
      %32 = vector.broadcast %cst_24 : f32 to vector<16x1xf32>
      %33 = arith.divf %31, %32 : vector<16x1xf32>
      %34 = vector.broadcast %26 : vector<16x1xf32> to vector<16x32xf32>
      %35 = arith.subf %22, %34 : vector<16x32xf32>
      %cst_25 = arith.constant 9.99999974E-6 : f32
      %36 = vector.broadcast %cst_25 : f32 to vector<16x1xf32>
      %37 = arith.addf %33, %36 : vector<16x1xf32>
      %38 = math.rsqrt %37 : vector<16x1xf32>
      %39 = vector.broadcast %38 : vector<16x1xf32> to vector<16x32xf32>
      %40 = arith.mulf %35, %39 : vector<16x32xf32>
      %c0_26 = arith.constant 0 : index
      %c0_27 = arith.constant 0 : index
      %41 = vector.load %arg3[%c0_26, %c0_27] : memref<1x32xf32, #tpu.memory_space<vmem>>, vector<1x32xf32>
      %42 = vector.broadcast %41 : vector<1x32xf32> to vector<16x32xf32>
      %43 = arith.mulf %40, %42 : vector<16x32xf32>
      %c0_28 = arith.constant 0 : index
      %c0_29 = arith.constant 0 : index
      %44 = vector.load %arg4[%c0_28, %c0_29] : memref<1x32xf32, #tpu.memory_space<vmem>>, vector<1x32xf32>
      %45 = vector.broadcast %44 : vector<1x32xf32> to vector<16x32xf32>
      %46 = arith.addf %43, %45 : vector<16x32xf32>
      %47 = arith.truncf %46 : vector<16x32xf32> to vector<16x32xbf16>
      %c0_30 = arith.constant 0 : index
      %c0_31 = arith.constant 0 : index
      %48 = vector.load %arg11[%c0_30, %c0_31] : memref<16x32xbf16, #tpu.memory_space<vmem>>, vector<16x32xbf16>
      tpu.vector_store %arg11[%c0_30, %c0_31], %47 {strides = array<i32>} : memref<16x32xbf16, #tpu.memory_space<vmem>>, vector<16x32xbf16>,
    } else {
    }
    %c0 = arith.constant 0 : index
    %c0_1 = arith.constant 0 : index
    %3 = vector.load %arg11[%c0, %c0_1] : memref<16x32xbf16, #tpu.memory_space<vmem>>, vector<16x32xbf16>
    %c0_2 = arith.constant 0 : index
    %c0_3 = arith.constant 0 : index
    %4 = vector.load %arg5[%c0_2, %c0_3] : memref<32x128xbf16, #tpu.memory_space<vmem>>, vector<32x128xbf16>
    %cst = arith.constant dense<0.000000e+00> : vector<16x128xf32>
    %5 = tpu.matmul %3, %4, %cst {dimension_numbers = #tpu.dot_dimension_numbers<[1], [0], [0], [1], [0, 0, 1, 1], [], []>} : vector<16x32xbf16>, vector<32x128xbf16>, vector<16x128xf32> -> vector<16x128xf32>
    %c0_4 = arith.constant 0 : index
    %c0_5 = arith.constant 0 : index
    %6 = vector.load %arg6[%c0_4, %c0_5] : memref<1x128xf32, #tpu.memory_space<vmem>>, vector<1x128xf32>
    %7 = vector.broadcast %6 : vector<1x128xf32> to vector<16x128xf32>
    %8 = arith.addf %5, %7 : vector<16x128xf32>
    %cst_6 = arith.constant 0.000000e+00 : f32
    %9 = vector.broadcast %cst_6 : f32 to vector<16x128xf32>
    %10 = arith.maximumf %8, %9 : vector<16x128xf32>
    %11 = arith.truncf %10 : vector<16x128xf32> to vector<16x128xbf16>
    %c0_7 = arith.constant 0 : index
    %c0_8 = arith.constant 0 : index
    %12 = vector.load %arg10[%c0_7, %c0_8] : memref<16x32xf32, #tpu.memory_space<vmem>>, vector<16x32xf32>
    %c0_9 = arith.constant 0 : index
    %c0_10 = arith.constant 0 : index
    %13 = vector.load %arg7[%c0_9, %c0_10] : memref<128x32xbf16, #tpu.memory_space<vmem>>, vector<128x32xbf16>
    %cst_11 = arith.constant dense<0.000000e+00> : vector<16x32xf32>
    %14 = tpu.matmul %11, %13, %cst_11 {dimension_numbers = #tpu.dot_dimension_numbers<[1], [0], [0], [1], [0, 0, 1, 1], [], []>} : vector<16x128xbf16>, vector<128x32xbf16>, vector<16x32xf32> -> vector<16x32xf32>
    %15 = arith.addf %12, %14 : vector<16x32xf32>
    %c0_12 = arith.constant 0 : index
    %c0_13 = arith.constant 0 : index
    %16 = vector.load %arg10[%c0_12, %c0_13] : memref<16x32xf32, #tpu.memory_space<vmem>>, vector<16x32xf32>
    tpu.vector_store %arg10[%c0_12, %c0_13], %15 {strides = array<i32>} : memref<16x32xf32, #tpu.memory_space<vmem>>, vector<16x32xf32>,
    %c0_i32_14 = arith.constant 0 : i32
    %17 = arith.cmpi eq, %arg1, %c0_i32_14 : i32
    %18 = arith.extui %17 : i1 to i32
    %c0_i32_15 = arith.constant 0 : i32
    %19 = arith.cmpi ne, %18, %c0_i32_15 : i32
    scf.if %19 {
      %c0_16 = arith.constant 0 : index
      %c0_17 = arith.constant 0 : index
      %20 = vector.load %arg10[%c0_16, %c0_17] : memref<16x32xf32, #tpu.memory_space<vmem>>, vector<16x32xf32>
      %c0_18 = arith.constant 0 : index
      %c0_19 = arith.constant 0 : index
      %21 = vector.load %arg8[%c0_18, %c0_19] : memref<1x32xf32, #tpu.memory_space<vmem>>, vector<1x32xf32>
      %22 = vector.broadcast %21 : vector<1x32xf32> to vector<16x32xf32>
      %23 = arith.addf %20, %22 : vector<16x32xf32>
      %c0_20 = arith.constant 0 : index
      %c0_21 = arith.constant 0 : index
      %24 = vector.load %arg2[%c0_20, %c0_21] : memref<16x32xf32, #tpu.memory_space<vmem>>, vector<16x32xf32>
      %25 = arith.addf %23, %24 : vector<16x32xf32>
      %c0_22 = arith.constant 0 : index
      %c0_23 = arith.constant 0 : index
      %26 = vector.load %arg9[%c0_22, %c0_23] : memref<16x32xf32, #tpu.memory_space<vmem>>, vector<16x32xf32>
      tpu.vector_store %arg9[%c0_22, %c0_23], %25 {strides = array<i32>} : memref<16x32xf32, #tpu.memory_space<vmem>>, vector<16x32xf32>,
    } else {
    }
    return
  }
  func.func @transform_0(%arg0: i32, %arg1: i32) -> (i32, i32) {
    %c0_i32 = arith.constant 0 : i32
    %c0_i32_0 = arith.constant 0 : i32
    return %arg0, %c0_i32 : i32, i32
  }
  func.func @transform_1(%arg0: i32, %arg1: i32) -> (i32, i32) {
    %c0_i32 = arith.constant 0 : i32
    %c0_i32_0 = arith.constant 0 : i32
    %c0_i32_1 = arith.constant 0 : i32
    return %c0_i32, %c0_i32_0 : i32, i32
  }
  func.func @transform_2(%arg0: i32, %arg1: i32) -> (i32, i32) {
    %c0_i32 = arith.constant 0 : i32
    %c0_i32_0 = arith.constant 0 : i32
    %c0_i32_1 = arith.constant 0 : i32
    return %c0_i32, %c0_i32_0 : i32, i32
  }
  func.func @transform_3(%arg0: i32, %arg1: i32) -> (i32, i32) {
    %c0_i32 = arith.constant 0 : i32
    %c0_i32_0 = arith.constant 0 : i32
    return %c0_i32, %arg1 : i32, i32
  }
  func.func @transform_4(%arg0: i32, %arg1: i32) -> (i32, i32) {
    %c0_i32 = arith.constant 0 : i32
    %c0_i32_0 = arith.constant 0 : i32
    return %c0_i32, %arg1 : i32, i32
  }
  func.func @transform_5(%arg0: i32, %arg1: i32) -> (i32, i32) {
    %c0_i32 = arith.constant 0 : i32
    %c0_i32_0 = arith.constant 0 : i32
    return %arg1, %c0_i32 : i32, i32
  }
  func.func @transform_6(%arg0: i32, %arg1: i32) -> (i32, i32) {
    %c0_i32 = arith.constant 0 : i32
    %c0_i32_0 = arith.constant 0 : i32
    %c0_i32_1 = arith.constant 0 : i32
    return %c0_i32, %c0_i32_0 : i32, i32
  }
  func.func @transform_7(%arg0: i32, %arg1: i32) -> (i32, i32) {
    %c0_i32 = arith.constant 0 : i32
    %c0_i32_0 = arith.constant 0 : i32
    return %arg0, %c0_i32 : i32, i32
  }
}

</mosaic_0001>

<bundles_post_ra>
// kernel: tile.11
= control target key start
LH: loop header
LB: loop body
LE: loop exit
PB: predicated region body
PF: predicated region fallthrough
CT: control target
= control target key end

     0   :  { %vm42_vm0 = vcmask 1047556   ;;  %vm44_vm1 = vcmask 64512   ;;  %s93_s22 = smov 8   ;;  %s94_s25 = smov 16   ;;  %vm54_vm2 = vcmask 261312   ;;  %vm64_vm3 = vcmask 195712   ;;  %s146_s0 = inlined_call_operand.vmem [shape: f32[8,4,8], index: 0, kind: input, shape index: {}]   ;;  %s147_s1 = inlined_call_operand.vmem [shape: f32[8,32], index: 1, kind: output, shape index: {}]  }
   0x1   :  { %v82_v0 = vld [vmem:[%s146_s0 + $0x1c] sm:$0xf]  ;;  %v83_v1 = vld [vmem:[%s146_s0 + $0x18] sm:$0xf]  ;;  %v84_v2 = vld [vmem:[%s146_s0 + $0x14] sm:$0xf] }
   0x2   :  { %8 = vst [vmem:[#allocation0 + $0x38] sm:$0xf] %v82_v0  ;;  %13 = vst [vmem:[#allocation0 + $0x30] sm:$0xf] %v83_v1  ;;  %v85_v3 = vld [vmem:[%s146_s0 + $0x10] sm:$0xf] }
   0x3   :  { %18 = vst [vmem:[#allocation0 + $0x28] sm:$0xf] %v84_v2  ;;  %v86_v4 = vld [vmem:[%s146_s0 + $0xc] sm:$0xf]  ;;  %v87_v5 = vld [vmem:[%s146_s0 + $0x8] sm:$0xf] }
   0x4   :  { %23 = vst [vmem:[#allocation0 + $0x20] sm:$0xf] %v85_v3  ;;  %28 = vst [vmem:[#allocation0 + $0x18] sm:$0xf] %v86_v4  ;;  %v88_v6 = vld [vmem:[%s146_s0 + $0x4] sm:$0xf] }
   0x5   :  { %33 = vst [vmem:[#allocation0 + $0x10] sm:$0xf] %v87_v5  ;;  %v38_v7 = vld [vmem:[%s146_s0] sm:$0xf]  ;;  %37 = vst [vmem:[#allocation0 + $0x8] sm:$0xf] %v88_v6 }
   0x6   :  { %39 = vst [vmem:[#allocation0] sm:$0xf] %v38_v7  ;;  %s92_s0 = smov 24   ;;  %vm74_vm4 = vcmask 130112  }
   0xb   :  { %v49_v8 = vld [vmem:[#allocation0 + $0x3] ss:$8 sm:$0xf0]   ;;  %v59_v9 = vld [vmem:[#allocation0 + $0x2] ss:$8 sm:$0xf0]  }
   0xc   :  { %v69_v14 = vld [vmem:[#allocation0 + $0x1] ss:$8 sm:$0xf0]   ;;  %v41_v17 = vld [vmem:[#allocation0] ss:$8 sm:$0xf0]  }
   0xd   :  { %v47_v10 = vld [vmem:[#allocation0 + $0x3] ss:$8 sm:$0xf]   ;;  %v57_v11 = vld [vmem:[#allocation0 + $0x2] ss:$8 sm:$0xf]  }
   0xe   :  { %v51_v12 = vsel %vm42_vm0, %v49_v8, %v47_v10  ;;  %v67_v13 = vld [vmem:[#allocation0 + $0x1] ss:$8 sm:$0xf]   ;;  %v40_v16 = vld [vmem:[#allocation0] ss:$8 sm:$0xf]   ;;  %v61_v18 = vsel %vm42_vm0, %v59_v9, %v57_v11 }
   0xf   :  { %52 = vrot.lane.b32.xlu0 %v51_v12, %s92_s0  ;;  %v71_v15 = vsel %vm42_vm0, %v69_v14, %v67_v13  ;;  %v43_v19 = vsel %vm42_vm0, %v41_v17, %v40_v16 }
  0x10   :  { %72 = vrot.lane.b32.xlu1 %v71_v15, %s93_s22  ;;  %45 = vst.msk [vmem:[%s147_s1] sm:$0xff] %vm44_vm1, %v43_v19  }
  0x13   :  { %62 = vrot.lane.b32.xlu0 %v61_v18, %s94_s25 }
  0x81   :  { %v53_v20 = vpop.permute.xlu0 %52  }
  0x82   :  { %55 = vst.msk [vmem:[%s147_s1] sm:$0xff] %vm54_vm2, %v53_v20   ;;  %v73_v21 = vpop.permute.xlu1 %72  }
  0x85   :  { %v63_v22 = vpop.permute.xlu0 %62  }
  0x86   :  { %65 = vst.msk [vmem:[%s147_s1] sm:$0xff] %vm64_vm3, %v63_v22  }
  0x87   :  { %75 = vst.msk [vmem:[%s147_s1] sm:$0xff] %vm74_vm4, %v73_v21  }

// kernel: _lambda_.9
= control target key start
LH: loop header
LB: loop body
LE: loop exit
PB: predicated region body
PF: predicated region fallthrough
CT: control target
= control target key end

     0   :  { %vm28_vm0 = vcmask 261120   ;;  %s290_s0 = inlined_call_operand.vmem [shape: f32[16,32], index: 0, kind: input, shape index: {}]   ;;  %s291_s1 = inlined_call_operand.vmem [shape: f32[1,32], index: 1, kind: input, shape index: {}]   ;;  %s292_s2 = inlined_call_operand.vmem [shape: f32[1,32], index: 2, kind: input, shape index: {}]   ;;  %s293_s3 = inlined_call_operand.vmem [shape: bf16[32,64], index: 3, kind: input, shape index: {}]   ;;  %s294_s4 = inlined_call_operand.vmem [shape: f32[1,64], index: 4, kind: input, shape index: {}]   ;;  %s295_s5 = inlined_call_operand.hbm [shape: f32[16,64], index: 5, kind: output, shape index: {}]  }
   0x1   :  { %v26_v0 = vld [vmem:[%s290_s0] sm:$0xff]  ;;  %v27_v1 = vld [vmem:[%s290_s0 + $0x8] sm:$0xff] }
   0x2   :  { %v29_v2 = vsel %vm28_vm0, %v26_v0, 0.0 }
   0x3   :  { %30 = vadd.xlane.f32.xlu0 %v29_v2 }
   0x4   :  { %10 = vsyncpa [#allocation4], 0  ;;  %v32_v3 = vsel %vm28_vm0, %v27_v1, 0.0  ;;  %v186_v14 = vld [vmem:[%s293_s3] sm:$0xff]   ;;  %v216_v15 = vmov 0.0   ;;  %v187_v16 = vld [vmem:[%s293_s3 + $0x8] sm:$0xff]  }
   0x5   :  { %173 = vmatprep.subr.bf16.mxu0 %v216_v15  ;;  %vm217_vm1 = vmmov 0   ;;  %v164_v25 = vld [vmem:[%s291_s1] ss:$0 sm:$0xff]  ;;  %s218_s1 = smov [#allocation3]   ;;  %vm145_vm2 = vcmask 523264  }
   0x6   :  { %174 = vmatpush3.bf16.msra.mxu0 %v186_v14  ;;  %177 = vmatprep.mubr.msk.bf16.mxu0 %vm217_vm1, %v216_v15  ;;  %v165_v29 = vld [vmem:[%s292_s2] ss:$0 sm:$0xff]  ;;  %s153_s30 = sshll.u32 %s218_s1, 4  ;;  %s154_s30 = int_to_ptr.vmem [resolvable:$true] %s153_s30 }
   0x7   :  { %33 = vadd.xlane.f32.xlu0 %v32_v3  ;;  %175 = vmatprep.subr.bf16.mxu0 %v216_v15  ;;  %v166_v35 = vld [vmem:[%s294_s4] ss:$0 sm:$0xff]  ;;  %s192_s2 = scalar_lea.vmem %s154_s30, 256  ;;  %p197_p1 = scmp.lt.s32.totalorder %s154_s30, %s154_s30 }
   0x8   :  { %p193_p0 = scmp.ne.s32.totalorder %s154_s30, %s192_s2  ;;  %p198_p2 = scmp.lt.s32.totalorder %s192_s2, %s192_s2 }
   0xa   :  { %176 = vmatpush3.bf16.msra.mxu0 %v187_v16  ;;  %p199_p3 = por %p198_p2, %p197_p1 }
   0xc   :  { %p200_p4 = pnand %p199_p3, %p193_p0 }
  0x90   :  { %v31_v4 = vpop.xlane.xlu0 %30 }
  0x91   :  { %v36_v5 = vmul.f32 0.03125, %v31_v4 }
  0x93   :  { %v38_v6 = vsub.f32 %v26_v0, %v36_v5 }
  0x94   :  { %v34_v7 = vpop.xlane.xlu0 %33 }
  0x95   :  { %v37_v8 = vmul.f32 0.03125, %v34_v7  ;;  %v40_v9 = vmul.f32 %v38_v6, %v38_v6 }
  0x97   :  { %v39_v10 = vsub.f32 %v27_v1, %v37_v8  ;;  %v42_v11 = vsel %vm28_vm0, %v40_v9, 0.0 }
  0x98   :  { %43 = vadd.xlane.f32.xlu1 %v42_v11 }
  0x99   :  { %v41_v12 = vmul.f32 %v39_v10, %v39_v10 }
  0x9b   :  { %v45_v13 = vsel %vm28_vm0, %v41_v12, 0.0 }
  0x9c   :  { %46 = vadd.xlane.f32.xlu1 %v45_v13 }
 0x125   :  { %v44_v17 = vpop.xlane.xlu1 %43 }
 0x126   :  { %v48_v18 = vmul.f32 0.03125, %v44_v17 }
 0x128   :  { %v50_v19 = vadd.f32 1e-05, %v48_v18 }
 0x129   :  { %v47_v20 = vpop.xlane.xlu1 %46 }
 0x12a   :  { %188 = vrsqrt.f32 %v50_v19  ;;  %v49_v21 = vmul.f32 0.03125, %v47_v20 }
 0x12c   :  { %v51_v22 = vadd.f32 1e-05, %v49_v21 }
 0x12e   :  { %190 = vrsqrt.f32 %v51_v22 }
 0x134   :  { %v189_v23 = vpop.eup %188 }
 0x135   :  { %v54_v24 = vmul.f32 %v189_v23, %v38_v6 }
 0x137   :  { %v63_v27 = vmul.f32 %v164_v25, %v54_v24 }
 0x138   :  { %v191_v26 = vpop.eup %190 }
 0x139   :  { %v55_v28 = vmul.f32 %v191_v26, %v39_v10  ;;  %v72_v31 = vadd.f32 %v165_v29, %v63_v27 }
 0x13b   :  { %v64_v30 = vmul.f32 %v164_v25, %v55_v28 }
 0x13d   :  { %v73_v32 = vadd.f32 %v165_v29, %v64_v30 }
 0x13f   :  { %v74_v33 = vpack.c.bf16 %v73_v32, %v72_v31 }
 0x141   :  { %75 = vst.msk [vmem:[#allocation2] sm:$0xff] %vm28_vm0, %v74_v33 }
 0x148   :  { %v76_v34 = vld [vmem:[#allocation2] sm:$0xff] }
 0x149   :  { %178 = vmatmul.mubr.msk.bf16.vlgmr.msra.gmra.mrb[0].mxu0 %vm28_vm0, %v76_v34 }
 0x21c   :  { %v138_v36 = vpop.f32.mrb[0].mxu0 }
 0x21d   :  { %v139_v37 = vadd.f32 %v166_v35, %v138_v36  ;;  %v179_v38 = vpop.f32.mrb[1].mxu0 }
 0x21e   :  { %v141_v39 = vpop.f32.mrb[2].mxu0 }
 0x21f   :  { %146 = vst.msk [vmem:[#allocation3] sm:$0xff] %vm145_vm2, %v139_v37  ;;  %v142_v40 = vadd.f32 %v166_v35, %v141_v39  ;;  %v180_v41 = vpop.f32.mrb[3].mxu0 }
 0x221   :  { %147 = vst.msk [vmem:[#allocation3 + $0x8] sm:$0xff] %vm145_vm2, %v142_v40 }
 0x222   :  { %203 = shalt.err (!%p200_p4)
}
 0x223   :  { %s204_s7 = scalar_lea.hbm %s295_s5, 256 }
 0x224   :  { %p205_p5 = scmp.ne.s32.totalorder %s295_s5, %s204_s7  ;;  %p208_p6 = scmp.lt.u32.totalorder %s204_s7, %s295_s5 }
 0x226   :  { %p210_p7 = pnand %p208_p6, %p205_p5 }
 0x228   :  { %213 = shalt.err (!%p210_p7)
}
 0x229   :  { %s219_s12 = smov 128   ;;  %s220_s13 = smov 8  }
 0x22a   :  { %159 = dma.vmem_to_hbm [thread:$0]  %s154_s30, 256, %s295_s5, [#allocation4], %s219_s12, %s219_s12, %s220_s13  }
 0x22b   :  { %214 = dma.done.wait [#allocation4], 256  }
 0x22c   :  { %215 = vsyncadd [#allocation4], 4294967040 }
 0x22d   :  { %163 = vsyncpa [#allocation4], 1 }

// kernel: _lambda_.6
= control target key start
LH: loop header
LB: loop body
LE: loop exit
PB: predicated region body
PF: predicated region fallthrough
CT: control target
= control target key end

     0   :  { %vm31_vm0 = vcmask 261120   ;;  %v361_v15 = vmov 0.0   ;;  %vm362_vm1 = vmmov 0   ;;  %s479_s0 = inlined_call_operand.vmem [shape: f32[16,32], index: 0, kind: input, shape index: {}]   ;;  %s480_s3 = inlined_call_operand.vmem [shape: bf16[32,128], index: 3, kind: input, shape index: {}]   ;;  %s481_s5 = inlined_call_operand.vmem [shape: bf16[128,32], index: 5, kind: input, shape index: {}]   ;;  %s482_s1 = inlined_call_operand.vmem [shape: f32[1,32], index: 1, kind: input, shape index: {}]   ;;  %s483_s2 = inlined_call_operand.vmem [shape: f32[1,32], index: 2, kind: input, shape index: {}]   ;;  %s484_s4 = inlined_call_operand.vmem [shape: f32[1,128], index: 4, kind: input, shape index: {}]   ;;  %s485_s6 = inlined_call_operand.vmem [shape: f32[1,32], index: 6, kind: input, shape index: {}]   ;;  %s486_s7 = inlined_call_operand.vmem [shape: f32[16,32], index: 7, kind: output, shape index: {}]  }
   0x1   :  { %v406_v0 = vld [vmem:[%s479_s0] sm:$0xff]  ;;  %v411_v1 = vld [vmem:[%s479_s0 + $0x8] sm:$0xff]  ;;  %317 = vmatprep.subr.bf16.mxu0 %v361_v15  ;;  %32 = vst.msk [vmem:[#allocation2] sm:$0xff] %vm31_vm0, %v361_v15  ;;  %33 = vst.msk [vmem:[#allocation2 + $0x8] sm:$0xff] %vm31_vm0, %v361_v15  ;;  %325 = vmatprep.subr.bf16.mxu1 %v361_v15 }
   0x2   :  { %v36_v2 = vsel %vm31_vm0, %v406_v0, 0.0  ;;  %v39_v3 = vsel %vm31_vm0, %v411_v1, 0.0  ;;  %v347_v14 = vld [vmem:[%s480_s3] sm:$0xff]   ;;  %v348_v16 = vld [vmem:[%s480_s3 + $0x8] sm:$0xff]   ;;  %321 = vmatprep.mubr.msk.bf16.mxu0 %vm362_vm1, %v361_v15  ;;  %341 = vmatprep.mubr.msk.bf16.mxu1 %vm362_vm1, %v361_v15  ;;  %v351_v19 = vld [vmem:[%s481_s5 + $0x10] sm:$0xff]  }
   0x3   :  { %37 = vadd.xlane.f32.xlu0 %v36_v2  ;;  %318 = vmatpush3.bf16.msra.mxu0 %v347_v14  ;;  %v349_v17 = vld [vmem:[%s481_s5] sm:$0xff]   ;;  %v350_v18 = vld [vmem:[%s481_s5 + $0x8] sm:$0xff]   ;;  %v352_v20 = vld [vmem:[%s481_s5 + $0x18] sm:$0xff]  }
   0x4   :  { %319 = vmatprep.subr.bf16.mxu0 %v361_v15  ;;  %326 = vmatpush3.bf16.msra.mxu1 %v349_v17  ;;  %v353_v21 = vld [vmem:[%s481_s5 + $0x20] sm:$0xff]   ;;  %v354_v22 = vld [vmem:[%s481_s5 + $0x28] sm:$0xff]   ;;  %v355_v41 = vld [vmem:[%s481_s5 + $0x30] sm:$0xff]  }
   0x5   :  { %327 = vmatprep.subr.bf16.mxu1 %v361_v15  ;;  %v290_v31 = vld [vmem:[%s482_s1] ss:$0 sm:$0xff]  ;;  %v356_v42 = vld [vmem:[%s481_s5 + $0x38] sm:$0xff]  }
   0x6   :  { %v291_v35 = vld [vmem:[%s483_s2] ss:$0 sm:$0xff] }
   0x7   :  { %40 = vadd.xlane.f32.xlu0 %v39_v3  ;;  %320 = vmatpush3.bf16.msra.mxu0 %v348_v16  ;;  %v292_v43 = vld [vmem:[%s484_s4] ss:$0 sm:$0xff] }
   0x8   :  { %328 = vmatpush3.bf16.msra.mxu1 %v350_v18  ;;  %v155_v53 = vld [vmem:[#allocation2] sm:$0xff]  ;;  %v156_v55 = vld [vmem:[#allocation2 + $0x8] sm:$0xff] }
   0x9   :  { %329 = vmatprep.subr.bf16.mxu1 %v361_v15  ;;  %v304_v61 = vld [vmem:[%s485_s6] ss:$0 sm:$0xff] }
   0xc   :  { %330 = vmatpush3.bf16.msra.mxu1 %v351_v19 }
   0xd   :  { %331 = vmatprep.subr.bf16.mxu1 %v361_v15 }
  0x10   :  { %332 = vmatpush3.bf16.msra.mxu1 %v352_v20 }
  0x11   :  { %333 = vmatprep.subr.bf16.mxu1 %v361_v15 }
  0x14   :  { %334 = vmatpush3.bf16.msra.mxu1 %v353_v21 }
  0x15   :  { %335 = vmatprep.subr.bf16.mxu1 %v361_v15 }
  0x18   :  { %336 = vmatpush3.bf16.msra.mxu1 %v354_v22 }
  0x19   :  { %337 = vmatprep.subr.bf16.mxu1 %v361_v15 }
  0x1c   :  { %338 = vmatpush3.bf16.msra.mxu1 %v355_v41 }
  0x1d   :  { %339 = vmatprep.subr.bf16.mxu1 %v361_v15 }
  0x20   :  { %340 = vmatpush3.bf16.msra.mxu1 %v356_v42 }
  0x90   :  { %v38_v4 = vpop.xlane.xlu0 %37 }
  0x91   :  { %v43_v5 = vmul.f32 0.03125, %v38_v4 }
  0x93   :  { %v45_v6 = vsub.f32 %v406_v0, %v43_v5 }
  0x94   :  { %v41_v7 = vpop.xlane.xlu0 %40 }
  0x95   :  { %v44_v8 = vmul.f32 0.03125, %v41_v7  ;;  %v47_v9 = vmul.f32 %v45_v6, %v45_v6 }
  0x97   :  { %v46_v10 = vsub.f32 %v411_v1, %v44_v8  ;;  %v49_v11 = vsel %vm31_vm0, %v47_v9, 0.0 }
  0x98   :  { %50 = vadd.xlane.f32.xlu1 %v49_v11 }
  0x99   :  { %v48_v12 = vmul.f32 %v46_v10, %v46_v10 }
  0x9b   :  { %v52_v13 = vsel %vm31_vm0, %v48_v12, 0.0 }
  0x9c   :  { %53 = vadd.xlane.f32.xlu1 %v52_v13 }
 0x125   :  { %v51_v23 = vpop.xlane.xlu1 %50 }
 0x126   :  { %v55_v24 = vmul.f32 0.03125, %v51_v23 }
 0x128   :  { %v57_v25 = vadd.f32 1e-05, %v55_v24 }
 0x129   :  { %v54_v26 = vpop.xlane.xlu1 %53 }
 0x12a   :  { %357 = vrsqrt.f32 %v57_v25  ;;  %v56_v27 = vmul.f32 0.03125, %v54_v26 }
 0x12c   :  { %v58_v28 = vadd.f32 1e-05, %v56_v27 }
 0x12e   :  { %359 = vrsqrt.f32 %v58_v28 }
 0x134   :  { %v358_v29 = vpop.eup %357 }
 0x135   :  { %v61_v30 = vmul.f32 %v358_v29, %v45_v6 }
 0x137   :  { %v70_v33 = vmul.f32 %v290_v31, %v61_v30 }
 0x138   :  { %v360_v32 = vpop.eup %359 }
 0x139   :  { %v62_v34 = vmul.f32 %v360_v32, %v46_v10  ;;  %v79_v37 = vadd.f32 %v291_v35, %v70_v33 }
 0x13b   :  { %v71_v36 = vmul.f32 %v290_v31, %v62_v34 }
 0x13d   :  { %v80_v38 = vadd.f32 %v291_v35, %v71_v36 }
 0x13f   :  { %v81_v39 = vpack.c.bf16 %v80_v38, %v79_v37 }
 0x141   :  { %82 = vst.msk [vmem:[#allocation3] sm:$0xff] %vm31_vm0, %v81_v39 }
 0x148   :  { %v83_v40 = vld [vmem:[#allocation3] sm:$0xff] }
 0x149   :  { %322 = vmatmul.mubr.msk.bf16.vlgmr.msra.gmra.mrb[0].mxu0 %vm31_vm0, %v83_v40 }
 0x21c   :  { %v145_v44 = vpop.f32.mrb[0].mxu0 }
 0x21d   :  { %v146_v45 = vadd.f32 %v292_v43, %v145_v44  ;;  %v323_v46 = vpop.f32.mrb[1].mxu0 }
 0x21e   :  { %v148_v47 = vpop.f32.mrb[2].mxu0 }
 0x21f   :  { %v149_v48 = vadd.f32 %v292_v43, %v148_v47  ;;  %v324_v49 = vpop.f32.mrb[3].mxu0  ;;  %v152_v50 = vmax.f32 %v146_v45, 0.0 }
 0x221   :  { %v153_v51 = vmax.f32 %v149_v48, 0.0 }
 0x223   :  { %v154_v52 = vpack.c.bf16 %v153_v51, %v152_v50 }
 0x225   :  { %342 = vmatmul.mubr.bf16.vlgmr.msra.gmra.mrb[0].mxu1 %v154_v52 }
 0x2f8   :  { %v255_v54 = vpop.f32.mrb[0].mxu1 }
 0x2f9   :  { %v262_v56 = vadd.f32 %v255_v54, %v155_v53  ;;  %v343_v57 = vpop.f32.mrb[1].mxu1 }
 0x2fa   :  { %v258_v58 = vpop.f32.mrb[2].mxu1 }
 0x2fb   :  { %264 = vst.msk [vmem:[#allocation2] sm:$0xff] %vm31_vm0, %v262_v56  ;;  %v263_v59 = vadd.f32 %v258_v58, %v156_v55  ;;  %v344_v60 = vpop.f32.mrb[3].mxu1 }
 0x2fd   :  { %265 = vst.msk [vmem:[#allocation2 + $0x8] sm:$0xff] %vm31_vm0, %v263_v59 }
 0x302   :  { %v269_v62 = vld [vmem:[#allocation2] sm:$0xff] }
 0x303   :  { %v278_v63 = vadd.f32 %v304_v61, %v269_v62 }
 0x304   :  { %v270_v2 = vld [vmem:[#allocation2 + $0x8] sm:$0xff] }
 0x305   :  { %v282_v3 = vadd.f32 %v278_v63, %v406_v0  ;;  %v279_v4 = vadd.f32 %v304_v61, %v270_v2 }
 0x307   :  { %284 = vst.msk [vmem:[%s486_s7] sm:$0xff] %vm31_vm0, %v282_v3  ;;  %v283_v5 = vadd.f32 %v411_v1, %v279_v4 }
 0x309   :  { %285 = vst.msk [vmem:[%s486_s7 + $0x8] sm:$0xff] %vm31_vm0, %v283_v5 }

// kernel: _lambda_.5
= control target key start
LH: loop header
LB: loop body
LE: loop exit
PB: predicated region body
PF: predicated region fallthrough
CT: control target
= control target key end

     0   :  { %s2108_s25 = smov 0   ;;  %s2368_s0 = inlined_call_operand.vmem [shape: f32[2,8,32], index: 0, kind: input, shape index: {}]   ;;  %s2369_s1 = inlined_call_operand.vmem [shape: f32[1,32], index: 1, kind: input, shape index: {}]   ;;  %s2370_s2 = inlined_call_operand.vmem [shape: f32[1,32], index: 2, kind: input, shape index: {}]   ;;  %s2371_s3 = inlined_call_operand.vmem [shape: bf16[32,32], index: 3, kind: input, shape index: {}]   ;;  %s2372_s4 = inlined_call_operand.vmem [shape: bf16[32,32], index: 4, kind: input, shape index: {}]   ;;  %s2373_s5 = inlined_call_operand.vmem [shape: bf16[32,32], index: 5, kind: input, shape index: {}]   ;;  %s2374_s6 = inlined_call_operand.vmem [shape: bf16[32,32], index: 6, kind: input, shape index: {}]   ;;  %s2375_s7 = inlined_call_operand.vmem [shape: bf16[4,32,32], index: 7, kind: input, shape index: {}]   ;;  %s2376_s8 = inlined_call_operand.vmem [shape: bf16[4,32,32], index: 8, kind: input, shape index: {}]   ;;  %s2377_s9 = inlined_call_operand.vmem [shape: f32[1,32], index: 9, kind: input, shape index: {}]   ;;  %s2378_s10 = inlined_call_operand.vmem [shape: f32[8,32], index: 10, kind: input, shape index: {}]   ;;  %s2379_s11 = inlined_call_operand.vmem [shape: f32[8,32], index: 11, kind: input, shape index: {}]   ;;  %s2380_s12 = inlined_call_operand.vmem [shape: f32[8,8], index: 12, kind: input, shape index: {}]   ;;  %s2381_s13 = inlined_call_operand.vmem [shape: f32[2,8,32], index: 13, kind: output, shape index: {}]  }
   0x1 LB: > { %s1681_s26 = sadd.s32 4294967295, %s2031_s25   ;;  %p1685_p0 = scmp.ge.s32.totalorder %s2031_s25, 1  ;;  %s2031_s25 = sphi %s2108_s25, %s23_s25  }
   0x2   : > { %p386_p1 = scmp.lt.s32.totalorder %s2031_s25, 3 }
   0x4   : > { %p387_p2 = pnand %p1685_p0, %p386_p1 }
   0x5   : > { %p428_p3 = scmp.lt.s32.totalorder (!%p387_p2), %s1681_s26, 1  ;;  %vm438_vm0 = vcmask (!%p387_p2), 261120   ;;  %v1983_v7 = vld [vmem:[%s2371_s3] sm:$0xff] (!%p387_p2)   ;;  %v2033_v9 = vmov (!%p387_p2), 0.0   ;;  %v1985_v10 = vld [vmem:[%s2371_s3 + $0x8] sm:$0xff] (!%p387_p2)   ;;  %vm2034_vm1 = vmmov (!%p387_p2), 0  }
   0x6   : > { %390 = sbr.rel (%p387_p2) target bundleno = 3139 (0xc43), region = 72  ;;  %v1984_v8 = vld [vmem:[%s2372_s4] sm:$0xff] (!%p387_p2)   ;;  %1813 = vmatprep.subr.bf16.mxu0 (!%p387_p2), %v2033_v9  ;;  %1821 = vmatprep.subr.bf16.mxu1 (!%p387_p2), %v2033_v9  ;;  %v1986_v11 = vld [vmem:[%s2372_s4 + $0x8] sm:$0xff] (!%p387_p2)   ;;  %vm717_vm2 = vcmask (!%p387_p2), 64512   ;;  %s2035_s14 = smov (!%p387_p2), 120   ;;  %vm836_vm3 = vcmask (!%p387_p2), 1043456  }
   0x7   : > { %1814 = vmatpush3.bf16.msra.mxu0 (!%p387_p2), %v1983_v7  ;;  %1822 = vmatpush3.bf16.msra.mxu1 (!%p387_p2), %v1984_v8  ;;  %v1688_v16 = vld [vmem:[%s2369_s1] ss:$0 sm:$0xff] (!%p387_p2)  ;;  %v1989_v24 = vld [vmem:[%s2373_s5 + $0x8] sm:$0xff] (!%p387_p2)   ;;  %s2036_s28 = smov (!%p387_p2), 112   ;;  %s2037_s20 = smov (!%p387_p2), 104  }
   0x8   : > { %1815 = vmatprep.subr.bf16.mxu0 (!%p387_p2), %v2033_v9  ;;  %1823 = vmatprep.subr.bf16.mxu1 (!%p387_p2), %v2033_v9  ;;  %v1689_v18 = vld [vmem:[%s2370_s2] ss:$0 sm:$0xff] (!%p387_p2)  ;;  %v1990_v25 = vld [vmem:[%s2374_s6 + $0x8] sm:$0xff] (!%p387_p2)  }
   0x9   : > { %1817 = vmatprep.mubr.msk.bf16.mxu0 (!%p387_p2), %vm2034_vm1, %v2033_v9  ;;  %1825 = vmatprep.mubr.msk.bf16.mxu1 (!%p387_p2), %vm2034_vm1, %v2033_v9  ;;  %v1987_v21 = vld [vmem:[%s2373_s5] sm:$0xff] (!%p387_p2)   ;;  %v1992_v27 = vld [vmem:[%s2375_s7 + $0x8] sm:$0xff] (!%p387_p2)  }
   0xa   : > { %v1988_v22 = vld [vmem:[%s2374_s6] sm:$0xff] (!%p387_p2)  }
   0xb   : > { %1816 = vmatpush3.bf16.msra.mxu0 (!%p387_p2), %v1985_v10  ;;  %1824 = vmatpush3.bf16.msra.mxu1 (!%p387_p2), %v1986_v11  ;;  %v1991_v26 = vld [vmem:[%s2375_s7] sm:$0xff] (!%p387_p2)  }
   0xc   : > { %1829 = vmatprep.subr.bf16.mxu0 (!%p387_p2), %v2033_v9  ;;  %1837 = vmatprep.subr.bf16.mxu1 (!%p387_p2), %v2033_v9  ;;  %v470_v28 = vld [vmem:[%s2378_s10] sm:$0xff] (!%p387_p2) }
   0xd   : > { %s2383_s26 = smov (!%p428_p3, %s1681_s26), 1  ;;  %v471_v29 = vld [vmem:[%s2379_s11] sm:$0xff] }
   0xe   : > { %s1686_s27 = sshll.u32 %s2383_s26, 3  ;;  %v2228_v62 = vld [vmem:[%s2380_s12] sm:$0xff] }
   0xf   : > { %s431_s30 = scalar_lea.vmem %s2368_s0, %s1686_s27  ;;  %s435_s23 = scalar_lea.vmem %s2381_s13, %s1686_s27 }
  0x10   : > { %v2124_v0 = vld [vmem:[%s431_s30] sm:$0xff] }
  0x11   : > { %v439_v1 = vsel %vm438_vm0, %v2124_v0, 0.0 }
  0x12   : > { %440 = vadd.xlane.f32.xlu0 %v439_v1 }
  0x9f   : > { %v441_v2 = vpop.xlane.xlu0 %440 }
  0xa0   : > { %v443_v3 = vmul.f32 0.03125, %v441_v2 }
  0xa2   : > { %v444_v4 = vsub.f32 %v2124_v0, %v443_v3 }
  0xa4   : > { %v445_v5 = vmul.f32 %v444_v4, %v444_v4 }
  0xa6   : > { %v446_v6 = vsel %vm438_vm0, %v445_v5, 0.0 }
  0xa7   : > { %447 = vadd.xlane.f32.xlu0 %v446_v6 }
 0x134   : > { %v448_v12 = vpop.xlane.xlu0 %447 }
 0x135   : > { %v449_v13 = vmul.f32 0.03125, %v448_v12  ;;  %v1993_v12 = vld [vmem:[%s2376_s8] sm:$0xff]  }
 0x137   : > { %v450_v14 = vadd.f32 1e-05, %v449_v13 }
 0x139   : > { %2007 = vrsqrt.f32 %v450_v14 }
 0x143   : > { %v2008_v15 = vpop.eup %2007 }
 0x144   : > { %v452_v17 = vmul.f32 %v2008_v15, %v444_v4 }
 0x146   : > { %v460_v19 = vmul.f32 %v1688_v16, %v452_v17 }
 0x148   : > { %v468_v20 = vadd.f32 %v1689_v18, %v460_v19 }
 0x14a   : > { %v2164_v23 = vpack.c.bf16 %v468_v20, %v468_v20  ;;  %v1994_v20 = vld [vmem:[%s2376_s8 + $0x8] sm:$0xff]  }
 0x14c   : > { %1818 = vmatmul.mubr.msk.bf16.vlgmr.msra.gmra.mrb[0].mxu0 %vm438_vm0, %v2164_v23  ;;  %1826 = vmatmul.mubr.msk.bf16.vlgmr.msra.gmra.mrb[0].mxu1 %vm438_vm0, %v2164_v23 }
 0x14d   : > { %1830 = vmatpush3.bf16.msra.mxu0 %v1987_v21  ;;  %1838 = vmatpush3.bf16.msra.mxu1 %v1988_v22  ;;  %v1995_v22 = vld [vmem:[%s2375_s7 + $0x10] sm:$0xff]  }
 0x14e   : > { %1831 = vmatprep.subr.bf16.mxu0 %v2033_v9  ;;  %1839 = vmatprep.subr.bf16.mxu1 %v2033_v9 }
 0x14f   : > { %1833 = vmatprep.mubr.msk.bf16.mxu0 %vm2034_vm1, %v2033_v9  ;;  %1841 = vmatprep.mubr.msk.bf16.mxu1 %vm2034_vm1, %v2033_v9 }
 0x151   : > { %1832 = vmatpush3.bf16.msra.mxu0 %v1989_v24  ;;  %1840 = vmatpush3.bf16.msra.mxu1 %v1990_v25 }
 0x152   : > { %1851 = vmatprep.subr.bf16.mxu1 %v2033_v9  ;;  %1845 = vmatprep.subr.bf16.mxu0 %v2033_v9 }
 0x154   : > { %1834 = vmatmul.mubr.msk.bf16.vlgmr.msra.gmra.mrb[4].mxu0 %vm438_vm0, %v2164_v23  ;;  %1842 = vmatmul.mubr.msk.bf16.vlgmr.msra.gmra.mrb[4].mxu1 %vm438_vm0, %v2164_v23 }
 0x155   : > { %1852 = vmatpush3.bf16.msra.mxu1 %v1991_v26  ;;  %1855 = vmatprep.mubr.msk.bf16.mxu1 %vm2034_vm1, %v2033_v9 }
 0x156   : > { %1853 = vmatprep.subr.bf16.mxu1 %v2033_v9  ;;  %1847 = vmatprep.mubr.msk.bf16.mxu0 %vm2034_vm1, %v2033_v9 }
 0x159   : > { %1854 = vmatpush3.bf16.msra.mxu1 %v1992_v27 }
 0x15a   : > { %1865 = vmatprep.subr.bf16.mxu1 %v2033_v9 }
 0x15c   : > { %1856 = vmatmul.mubr.msk.bf16.vlgmr.msra.gmra.mrb[8].mxu1 %vm438_vm0, %v2164_v23 }
 0x15d   : > { %1869 = vmatprep.mubr.msk.bf16.mxu1 %vm2034_vm1, %v2033_v9  ;;  %1866 = vmatpush3.bf16.msra.mxu1 %v1993_v12 }
 0x15e   : > { %1867 = vmatprep.subr.bf16.mxu1 %v2033_v9 }
 0x161   : > { %1868 = vmatpush3.bf16.msra.mxu1 %v1994_v20 }
 0x162   : > { %1879 = vmatprep.subr.bf16.mxu1 %v2033_v9 }
 0x21f   : > { %v525_v30 = vpop.f32.mrb[0].mxu0  ;;  %v582_v31 = vpop.f32.mrb[0].mxu1 }
 0x220   : > { %v531_v32 = vmul.f32 %v525_v30, %v470_v28  ;;  %v588_v33 = vmul.f32 %v582_v31, %v471_v29  ;;  %v1819_v34 = vpop.f32.mrb[1].mxu0  ;;  %v1827_v35 = vpop.f32.mrb[1].mxu1 }
 0x221   : > { %v528_v36 = vpop.f32.mrb[2].mxu0  ;;  %v585_v37 = vpop.f32.mrb[2].mxu1 }
 0x222   : > { %v589_v38 = vadd.f32 %v588_v33, %v531_v32  ;;  %v1820_v39 = vpop.f32.mrb[3].mxu0  ;;  %v1828_v40 = vpop.f32.mrb[3].mxu1 }
 0x223   : > { %v1997_v40 = vld [vmem:[%s2376_s8 + $0x10] sm:$0xff]  }
 0x224   : > { %v590_v55 = vmul.f32 0.35355338, %v589_v38 }
 0x226   : > { %v2217_v60 = vpack.c.bf16 %v590_v55, %v590_v55  ;;  %v1998_v55 = vld [vmem:[%s2376_s8 + $0x18] sm:$0xff]  }
 0x227   : > { %v642_v41 = vpop.f32.mrb[4].mxu0  ;;  %v699_v42 = vpop.f32.mrb[4].mxu1 }
 0x228   : > { %v648_v43 = vmul.f32 %v642_v41, %v470_v28  ;;  %v705_v44 = vmul.f32 %v699_v42, %v471_v29  ;;  %v1835_v45 = vpop.f32.mrb[5].mxu0  ;;  %v1843_v46 = vpop.f32.mrb[5].mxu1  ;;  %v1996_v28 = vld [vmem:[%s2375_s7 + $0x18] sm:$0xff]  }
 0x229   : > { %v645_v47 = vpop.f32.mrb[6].mxu0  ;;  %v702_v48 = vpop.f32.mrb[6].mxu1 }
 0x22a   : > { %v706_v49 = vadd.f32 %v705_v44, %v648_v43  ;;  %v1836_v50 = vpop.f32.mrb[7].mxu0  ;;  %v1844_v51 = vpop.f32.mrb[7].mxu1 }
 0x22c   : > { %v2210_v52 = vpack.c.bf16 %v706_v49, %v706_v49 }
 0x22e   : > { %945 = vrot.lane.b32.xlu0 %v2210_v52, %s2035_s14  ;;  %v722_v53 = vsel %vm717_vm2, %v2210_v52, 0 }
 0x22f   : > { %1846 = vmatpush3.bf16.xpose.msra.mxu0 %v722_v53  ;;  %v826_v54 = vpop.f32.mrb[8].mxu1 }
 0x230   : > { %v1857_v56 = vpop.f32.mrb[9].mxu1  ;;  %1859 = vmatprep.subr.bf16.mxu0 %v2033_v9  ;;  %v832_v58 = vpack.c.bf16 %v826_v54, %v826_v54 }
 0x231   : > { %v829_v57 = vpop.f32.mrb[10].mxu1 }
 0x232   : > { %v1858_v59 = vpop.f32.mrb[11].mxu1  ;;  %v838_v61 = vsel %vm836_vm3, %v832_v58, 0  ;;  %v1999_v57 = vld [vmem:[%s2375_s7 + $0x20] sm:$0xff]  }
 0x236   : > { %1848 = vmatmul.mubr.msk.bf16.vlgmr.msra.gmra.mrb[8].mxu0 %vm717_vm2, %v2217_v60 }
 0x237   : > { %1860 = vmatpush3.bf16.msra.mxu0 %v838_v61  ;;  %1861 = vmatprep.mubr.msk.bf16.mxu0 %vm2034_vm1, %v2033_v9 }
 0x238   : > { %1873 = vmatprep.subr.bf16.mxu0 %v2033_v9 }
 0x2a0   : > { %v946_v16 = vpop.permute.xlu0 %945 }
 0x2a1   : > { %v951_v18 = vsel %vm717_vm2, %v946_v16, 0 }
 0x309   : > { %v758_v63 = vpop.f32.mrb[8].mxu0 }
 0x30a   : > { %v759_v1 = vadd.f32 %v758_v63, %v2228_v62  ;;  %v1849_v2 = vpop.f32.mrb[9].mxu0 }
 0x30b   : > { %v761_v3 = vpop.f32.mrb[10].mxu0 }
 0x30c   : > { %v1850_v4 = vpop.f32.mrb[11].mxu0  ;;  %v764_v5 = vsel %vm717_vm2, %v759_v1, -inf }
 0x30d   : > { %765 = vmax.xlane.f32.xlu1 %v764_v5 }
 0x39a   : > { %v766_v6 = vpop.xlane.xlu1 %765 }
 0x39b   : > { %v767_v7 = vsub.f32 %v759_v1, %v766_v6  ;;  %v2000_v1 = vld [vmem:[%s2375_s7 + $0x28] sm:$0xff]  }
 0x39d   : > { %v768_v8 = vmul.f32 1.442695, %v767_v7 }
 0x39f   : > { %2009 = vpow2.f32 %v768_v8 }
 0x3a9   : > { %v2010_v10 = vpop.eup %2009 }
 0x3aa   : > { %v770_v11 = vsel %vm717_vm2, %v2010_v10, 0.0 }
 0x3ab   : > { %771 = vadd.xlane.f32.xlu1 %v770_v11 }
 0x3bc   : > { %942 = vrot.lane.b32.xlu1 %v2217_v60, %s2035_s14 }
 0x438   : > { %v772_v13 = vpop.xlane.xlu1 %771 }
 0x439   : > { %2011 = vrcp.f32 %v772_v13 }
 0x43c   : > { %v943_v19 = vpop.permute.xlu1 %942 }
 0x443   : > { %v2012_v14 = vpop.eup %2011 }
 0x444   : > { %v774_v15 = vmul.f32 %v2012_v14, %v2010_v10  ;;  %v2001_v14 = vld [vmem:[%s2376_s8 + $0x20] sm:$0xff]  }
 0x446   : > { %v775_v17 = vpack.c.bf16 %v774_v15, %v774_v15 }
 0x448   : > { %1862 = vmatmul.mubr.msk.bf16.vlgmr.msra.gmra.mrb[12].mxu0 %vm717_vm2, %v775_v17 }
 0x449   : > { %1874 = vmatpush3.bf16.xpose.msra.mxu0 %v951_v18  ;;  %1875 = vmatprep.mubr.msk.bf16.mxu0 %vm2034_vm1, %v2033_v9 }
 0x44a   : > { %1887 = vmatprep.subr.bf16.mxu0 %v2033_v9 }
 0x450   : > { %1876 = vmatmul.mubr.msk.bf16.vlgmr.msra.gmra.mrb[16].mxu0 %vm717_vm2, %v943_v19 }
 0x451   : > { %1889 = vmatprep.mubr.msk.bf16.mxu0 %vm2034_vm1, %v2033_v9 }
 0x51b   : > { %v874_v21 = vpop.f32.mrb[12].mxu0 }
 0x51c   : > { %v880_v24 = vpack.c.bf16 %v874_v21, %v874_v21  ;;  %v1863_v25 = vpop.f32.mrb[13].mxu0 }
 0x51d   : > { %v877_v26 = vpop.f32.mrb[14].mxu0 }
 0x51e   : > { %v1864_v27 = vpop.f32.mrb[15].mxu0  ;;  %1870 = vmatmul.mubr.msk.bf16.vlgmr.msra.gmra.mrb[12].mxu1 %vm438_vm0, %v880_v24 }
 0x51f   : > { %1880 = vmatpush3.bf16.msra.mxu1 %v1995_v22  ;;  %1883 = vmatprep.mubr.msk.bf16.mxu1 %vm2034_vm1, %v2033_v9  ;;  %v2002_v27 = vld [vmem:[%s2376_s8 + $0x28] sm:$0xff]  }
 0x520   : > { %1881 = vmatprep.subr.bf16.mxu1 %v2033_v9 }
 0x523   : > { %v987_v29 = vpop.f32.mrb[16].mxu0  ;;  %1882 = vmatpush3.bf16.msra.mxu1 %v1996_v28 }
 0x524   : > { %v988_v30 = vadd.f32 %v987_v29, %v2228_v62  ;;  %v1877_v31 = vpop.f32.mrb[17].mxu0  ;;  %1893 = vmatprep.subr.bf16.mxu1 %v2033_v9  ;;  %v2003_v29 = vld [vmem:[%s2375_s7 + $0x30] sm:$0xff]  }
 0x525   : > { %v990_v32 = vpop.f32.mrb[18].mxu0 }
 0x526   : > { %v1878_v33 = vpop.f32.mrb[19].mxu0  ;;  %1884 = vmatmul.mubr.msk.bf16.vlgmr.msra.gmra.mrb[16].mxu1 %vm438_vm0, %v2164_v23  ;;  %v993_v34 = vsel %vm717_vm2, %v988_v30, -inf }
 0x527   : > { %994 = vmax.xlane.f32.xlu1 %v993_v34  ;;  %1897 = vmatprep.mubr.msk.bf16.mxu1 %vm2034_vm1, %v2033_v9  ;;  %v2004_v34 = vld [vmem:[%s2375_s7 + $0x38] sm:$0xff]  }
 0x528   : > { %1894 = vmatpush3.bf16.msra.mxu1 %v1997_v40 }
 0x529   : > { %1895 = vmatprep.subr.bf16.mxu1 %v2033_v9 }
 0x52c   : > { %1896 = vmatpush3.bf16.msra.mxu1 %v1998_v55 }
 0x52d   : > { %1907 = vmatprep.subr.bf16.mxu1 %v2033_v9 }
 0x538   : > { %1171 = vrot.lane.b32.xlu1 %v2217_v60, %s2036_s28 }
 0x5b4   : > { %v995_v35 = vpop.xlane.xlu1 %994 }
 0x5b5   : > { %v996_v36 = vsub.f32 %v988_v30, %v995_v35 }
 0x5b7   : > { %v997_v37 = vmul.f32 1.442695, %v996_v36 }
 0x5b8   : > { %v1172_v54 = vpop.permute.xlu1 %1171 }
 0x5b9   : > { %2013 = vpow2.f32 %v997_v37 }
 0x5c3   : > { %v2014_v38 = vpop.eup %2013 }
 0x5c4   : > { %v999_v39 = vsel %vm717_vm2, %v2014_v38, 0.0 }
 0x5c5   : > { %1000 = vadd.xlane.f32.xlu0 %v999_v39 }
 0x5db   : > { %1173 = vrot.lane.b32.xlu0 %v2210_v52, %s2036_s28 }
 0x5f9   : > { %v1056_v41 = vpop.f32.mrb[16].mxu1 }
 0x5fa   : > { %v1062_v42 = vpack.c.bf16 %v1056_v41, %v1056_v41  ;;  %v1885_v43 = vpop.f32.mrb[17].mxu1 }
 0x5fb   : > { %v1059_v44 = vpop.f32.mrb[18].mxu1 }
 0x5fc   : > { %v1067_v45 = vsel %vm836_vm3, %v1062_v42, 0  ;;  %v1886_v46 = vpop.f32.mrb[19].mxu1 }
 0x5fd   : > { %1888 = vmatpush3.bf16.msra.mxu0 %v1067_v45  ;;  %v2005_v45 = vld [vmem:[%s2376_s8 + $0x30] sm:$0xff]  }
 0x5fe   : > { %1901 = vmatprep.subr.bf16.mxu0 %v2033_v9 }
 0x652   : > { %v1001_v47 = vpop.xlane.xlu0 %1000 }
 0x653   : > { %2015 = vrcp.f32 %v1001_v47 }
 0x656   : > { %v1174_v50 = vpop.permute.xlu0 %1173 }
 0x657   : > { %v1179_v53 = vsel %vm717_vm2, %v1174_v50, 0 }
 0x65d   : > { %v2016_v48 = vpop.eup %2015 }
 0x65e   : > { %v1003_v49 = vmul.f32 %v2016_v48, %v2014_v38 }
 0x660   : > { %v1004_v51 = vpack.c.bf16 %v1003_v49, %v1003_v49 }
 0x662   : > { %1890 = vmatmul.mubr.msk.bf16.vlgmr.msra.gmra.mrb[20].mxu0 %vm717_vm2, %v1004_v51 }
 0x663   : > { %1902 = vmatpush3.bf16.xpose.msra.mxu0 %v1179_v53  ;;  %1903 = vmatprep.mubr.msk.bf16.mxu0 %vm2034_vm1, %v2033_v9 }
 0x664   : > { %1915 = vmatprep.subr.bf16.mxu0 %v2033_v9 }
 0x66a   : > { %1904 = vmatmul.mubr.msk.bf16.vlgmr.msra.gmra.mrb[24].mxu0 %vm717_vm2, %v1172_v54 }
 0x66b   : > { %1917 = vmatprep.mubr.msk.bf16.mxu0 %vm2034_vm1, %v2033_v9 }
 0x735   : > { %v1103_v56 = vpop.f32.mrb[20].mxu0 }
 0x736   : > { %v1109_v58 = vpack.c.bf16 %v1103_v56, %v1103_v56  ;;  %v1891_v59 = vpop.f32.mrb[21].mxu0 }
 0x737   : > { %v1106_v61 = vpop.f32.mrb[22].mxu0 }
 0x738   : > { %v1892_v63 = vpop.f32.mrb[23].mxu0  ;;  %1898 = vmatmul.mubr.msk.bf16.vlgmr.msra.gmra.mrb[12].mxu1 %vm438_vm0, %v1109_v58 }
 0x739   : > { %1908 = vmatpush3.bf16.msra.mxu1 %v1999_v57  ;;  %1911 = vmatprep.mubr.msk.bf16.mxu1 %vm2034_vm1, %v2033_v9  ;;  %v1702_v63 = vld [vmem:[%s2377_s9] ss:$0 sm:$0xff] }
 0x73a   : > { %1909 = vmatprep.subr.bf16.mxu1 %v2033_v9 }
 0x73d   : > { %v1215_v2 = vpop.f32.mrb[24].mxu0  ;;  %1910 = vmatpush3.bf16.msra.mxu1 %v2000_v1  ;;  %v716_v1 = vadd.f32 %v1702_v63, %v2124_v0 }
 0x73e   : > { %v1216_v3 = vadd.f32 %v1215_v2, %v2228_v62  ;;  %v1905_v4 = vpop.f32.mrb[25].mxu0  ;;  %1921 = vmatprep.subr.bf16.mxu1 %v2033_v9 }
 0x73f   : > { %v1218_v5 = vpop.f32.mrb[26].mxu0 }
 0x740   : > { %v1906_v6 = vpop.f32.mrb[27].mxu0  ;;  %1912 = vmatmul.mubr.msk.bf16.vlgmr.msra.gmra.mrb[20].mxu1 %vm438_vm0, %v2164_v23  ;;  %v1221_v7 = vsel %vm717_vm2, %v1216_v3, -inf }
 0x741   : > { %1222 = vmax.xlane.f32.xlu1 %v1221_v7  ;;  %1925 = vmatprep.mubr.msk.bf16.mxu1 %vm2034_vm1, %v2033_v9 }
 0x742   : > { %1922 = vmatpush3.bf16.msra.mxu1 %v2001_v14 }
 0x743   : > { %1923 = vmatprep.subr.bf16.mxu1 %v2033_v9 }
 0x746   : > { %1924 = vmatpush3.bf16.msra.mxu1 %v2002_v27 }
 0x747   : > { %1935 = vmatprep.subr.bf16.mxu1 %v2033_v9 }
 0x752   : > { %1399 = vrot.lane.b32.xlu1 %v2217_v60, %s2037_s20 }
 0x7ce   : > { %v1223_v8 = vpop.xlane.xlu1 %1222 }
 0x7cf   : > { %v1224_v10 = vsub.f32 %v1216_v3, %v1223_v8 }
 0x7d1   : > { %v1225_v11 = vmul.f32 1.442695, %v1224_v10 }
 0x7d2   : > { %v1400_v26 = vpop.permute.xlu1 %1399 }
 0x7d3   : > { %2017 = vpow2.f32 %v1225_v11 }
 0x7dd   : > { %v2018_v12 = vpop.eup %2017 }
 0x7de   : > { %v1227_v13 = vsel %vm717_vm2, %v2018_v12, 0.0 }
 0x7df   : > { %1228 = vadd.xlane.f32.xlu0 %v1227_v13 }
 0x7f5   : > { %1401 = vrot.lane.b32.xlu0 %v2210_v52, %s2037_s20 }
 0x813   : > { %v1284_v15 = vpop.f32.mrb[20].mxu1 }
 0x814   : > { %v1290_v16 = vpack.c.bf16 %v1284_v15, %v1284_v15  ;;  %v1913_v60 = vpop.f32.mrb[21].mxu1 }
 0x815   : > { %v1287_v17 = vpop.f32.mrb[22].mxu1 }
 0x816   : > { %v1295_v18 = vsel %vm836_vm3, %v1290_v16, 0  ;;  %v1914_v19 = vpop.f32.mrb[23].mxu1 }
 0x817   : > { %1916 = vmatpush3.bf16.msra.mxu0 %v1295_v18 }
 0x818   : > { %1929 = vmatprep.subr.bf16.mxu0 %v2033_v9 }
 0x86c   : > { %v1229_v20 = vpop.xlane.xlu0 %1228 }
 0x86d   : > { %2019 = vrcp.f32 %v1229_v20 }
 0x870   : > { %v1402_v22 = vpop.permute.xlu0 %1401 }
 0x871   : > { %v1407_v25 = vsel %vm717_vm2, %v1402_v22, 0 }
 0x877   : > { %v2020_v52 = vpop.eup %2019 }
 0x878   : > { %v1231_v21 = vmul.f32 %v2020_v52, %v2018_v12 }
 0x87a   : > { %v1232_v24 = vpack.c.bf16 %v1231_v21, %v1231_v21 }
 0x87c   : > { %1918 = vmatmul.mubr.msk.bf16.vlgmr.msra.gmra.mrb[28].mxu0 %vm717_vm2, %v1232_v24 }
 0x87d   : > { %1930 = vmatpush3.bf16.xpose.msra.mxu0 %v1407_v25  ;;  %1931 = vmatprep.mubr.msk.bf16.mxu0 %vm2034_vm1, %v2033_v9 }
 0x87e   : > { %1943 = vmatprep.subr.bf16.mxu0 %v2033_v9 }
 0x884   : > { %1932 = vmatmul.mubr.msk.bf16.vlgmr.msra.gmra.mrb[32].mxu0 %vm717_vm2, %v1400_v26 }
 0x885   : > { %1945 = vmatprep.mubr.msk.bf16.mxu0 %vm2034_vm1, %v2033_v9 }
 0x94f   : > { %v1331_v28 = vpop.f32.mrb[28].mxu0 }
 0x950   : > { %v1337_v30 = vpack.c.bf16 %v1331_v28, %v1331_v28  ;;  %v1919_v31 = vpop.f32.mrb[29].mxu0 }
 0x951   : > { %v1334_v32 = vpop.f32.mrb[30].mxu0 }
 0x952   : > { %v1920_v33 = vpop.f32.mrb[31].mxu0  ;;  %1926 = vmatmul.mubr.msk.bf16.vlgmr.msra.gmra.mrb[12].mxu1 %vm438_vm0, %v1337_v30 }
 0x953   : > { %1936 = vmatpush3.bf16.msra.mxu1 %v2003_v29  ;;  %1939 = vmatprep.mubr.msk.bf16.mxu1 %vm2034_vm1, %v2033_v9 }
 0x954   : > { %1937 = vmatprep.subr.bf16.mxu1 %v2033_v9 }
 0x957   : > { %v1443_v35 = vpop.f32.mrb[32].mxu0  ;;  %1938 = vmatpush3.bf16.msra.mxu1 %v2004_v34 }
 0x958   : > { %v1444_v36 = vadd.f32 %v1443_v35, %v2228_v62  ;;  %v1933_v37 = vpop.f32.mrb[33].mxu0  ;;  %1949 = vmatprep.subr.bf16.mxu1 %v2033_v9 }
 0x959   : > { %v1446_v38 = vpop.f32.mrb[34].mxu0 }
 0x95a   : > { %v1934_v39 = vpop.f32.mrb[35].mxu0  ;;  %1940 = vmatmul.mubr.msk.bf16.vlgmr.msra.gmra.mrb[24].mxu1 %vm438_vm0, %v2164_v23  ;;  %v1449_v40 = vsel %vm717_vm2, %v1444_v36, -inf }
 0x95b   : > { %1450 = vmax.xlane.f32.xlu1 %v1449_v40  ;;  %1953 = vmatprep.mubr.msk.bf16.mxu1 %vm2034_vm1, %v2033_v9 }
 0x95c   : > { %1950 = vmatpush3.bf16.msra.mxu1 %v2005_v45 }
 0x95d   : > { %1951 = vmatprep.subr.bf16.mxu1 %v2033_v9  ;;  %v2006_v9 = vld [vmem:[%s2376_s8 + $0x38] sm:$0xff]  }
 0x960   : > { %1952 = vmatpush3.bf16.msra.mxu1 %v2006_v9 }
 0x9e8   : > { %v1451_v41 = vpop.xlane.xlu1 %1450 }
 0x9e9   : > { %v1452_v42 = vsub.f32 %v1444_v36, %v1451_v41 }
 0x9eb   : > { %v1453_v43 = vmul.f32 1.442695, %v1452_v42 }
 0x9ed   : > { %2021 = vpow2.f32 %v1453_v43 }
 0x9f7   : > { %v2022_v44 = vpop.eup %2021 }
 0x9f8   : > { %v1455_v62 = vsel %vm717_vm2, %v2022_v44, 0.0 }
 0x9f9   : > { %1456 = vadd.xlane.f32.xlu0 %v1455_v62 }
 0xa2d   : > { %v1512_v23 = vpop.f32.mrb[24].mxu1 }
 0xa2e   : > { %v1518_v46 = vpack.c.bf16 %v1512_v23, %v1512_v23  ;;  %v1941_v47 = vpop.f32.mrb[25].mxu1 }
 0xa2f   : > { %v1515_v48 = vpop.f32.mrb[26].mxu1 }
 0xa30   : > { %v1523_v49 = vsel %vm836_vm3, %v1518_v46, 0  ;;  %v1942_v50 = vpop.f32.mrb[27].mxu1 }
 0xa31   : > { %1944 = vmatpush3.bf16.msra.mxu0 %v1523_v49 }
 0xa86   : > { %v1457_v51 = vpop.xlane.xlu0 %1456 }
 0xa87   : > { %2023 = vrcp.f32 %v1457_v51 }
 0xa91   : > { %v2024_v53 = vpop.eup %2023 }
 0xa92   : > { %v1459_v54 = vmul.f32 %v2024_v53, %v2022_v44 }
 0xa94   : > { %v1460_v55 = vpack.c.bf16 %v1459_v54, %v1459_v54 }
 0xa96   : > { %1946 = vmatmul.mubr.msk.bf16.vlgmr.msra.gmra.mrb[36].mxu0 %vm717_vm2, %v1460_v55 }
 0xb69   : > { %v1559_v56 = vpop.f32.mrb[36].mxu0 }
 0xb6a   : > { %v1565_v57 = vpack.c.bf16 %v1559_v56, %v1559_v56  ;;  %v1947_v58 = vpop.f32.mrb[37].mxu0 }
 0xb6b   : > { %v1562_v59 = vpop.f32.mrb[38].mxu0 }
 0xb6c   : > { %v1948_v61 = vpop.f32.mrb[39].mxu0  ;;  %1954 = vmatmul.mubr.msk.bf16.vlgmr.msra.gmra.mrb[12].mxu1 %vm438_vm0, %v1565_v57 }
 0xc3f   : > { %v1620_v2 = vpop.f32.mrb[12].mxu1 }
 0xc40   : > { %v1957_v3 = vadd.f32 %v1620_v2, %v716_v1  ;;  %v1955_v4 = vpop.f32.mrb[13].mxu1 }
 0xc41   : > { %v1623_v5 = vpop.f32.mrb[14].mxu1 }
 0xc42   : > { %1627 = vst.msk [vmem:[%s435_s23] sm:$0xff] %vm438_vm0, %v1957_v3  ;;  %v1956_v6 = vpop.f32.mrb[15].mxu1 }
 0xc43 PF: > { %s23_s25 = sadd.s32 1, %s2031_s25  }
 0xc44   : > { %p20_p4 = scmp.ge.s32.totalorder %s23_s25, 4  }
 0xc46   :  { %22 = sbr.rel (!%p20_p4) target bundleno = 1 (0x1), region = 108 }

</bundles_post_ra>
